<compile_context>
chip_gen: v6e
topology: v6e:2x2x1
jax: 0.10.0
libtpu: 0.0.40
codegen_flags: <defaults>
</compile_context>

<pallas_src>
import functools

import jax
import jax.numpy as jnp
from jax import lax
from jax.experimental import pallas as pl
from jax.experimental.pallas import tpu as pltpu


def reshape_state(state):
    """(2, B, h) encoder state -> (1, B, 2h), like the PyTorch helper."""
    h_state, c_state = state
    new_h = jnp.concatenate([h_state[:-1], h_state[1:]], axis=2)
    new_c = jnp.concatenate([c_state[:-1], c_state[1:]], axis=2)
    return (new_h, new_c)


def _round_up(x, m):
    return (x + m - 1) // m * m


def _ifgo_to_ifog(w, hidden):
    """Reorder PyTorch LSTM gate columns (i, f, g, o) -> (i, f, o, g)."""
    return jnp.concatenate(
        [w[..., :2 * hidden], w[..., 3 * hidden:], w[..., 2 * hidden:3 * hidden]],
        axis=-1)


def _lstm_decoder_kernel(x_ref, wih_ref, whh_ref, b_ref, h0_ref, c0_ref,
                         out_ref, hn_ref, cn_ref,
                         h_s, c_s, gx_s, out_s, *, seq_len):
    """One grid step = one time-chunk of tc steps.

    x_ref: (tc*B, H) bf16 (time-major);  out_ref: (B, tc, H) f32 (batch-first).
    Weights are pre-reordered to (i, f, o, g) gate column order.
    """
    B, H = h0_ref.shape
    tc = out_s.shape[0]
    chunk = pl.program_id(0)

    # Initialize the carried (h, c) state from dec_state on the first chunk.
    @pl.when(chunk == 0)
    def _():
        h_s[...] = h0_ref[...]
        c_s[...] = c0_ref[...]

    # Hoisted input projection for the whole chunk: one batched MXU matmul
    # (bf16 inputs, f32 accumulation) instead of tc tiny matmuls in the loop.
    gx_s[...] = (jnp.dot(x_ref[...], wih_ref[...],
                         preferred_element_type=jnp.float32)
                 + b_ref[...])

    whh = whh_ref[...]                       # resident bf16 recurrent weights
    needs_mask = (seq_len % tc) != 0         # only if T was padded up to T_pad
    chunk_base = chunk * tc

    h_init = h_s[...]
    carry0 = (h_init, h_init.astype(whh.dtype), c_s[...])

    def step(t, carry):
        h, h_bf, c = carry                   # state lives in vregs, not VMEM
        row = pl.multiple_of(t * B, B)       # sublane-aligned slice start
        gates = (gx_s[pl.ds(row, B), :]
                 + jnp.dot(h_bf, whh, preferred_element_type=jnp.float32))
        # Reordered gate layout (i, f, o, g): one sigmoid + one tanh per step.
        sig = jax.nn.sigmoid(gates[:, :3 * H])
        g_g = jnp.tanh(gates[:, 3 * H:])
        c_new = sig[:, H:2 * H] * c + sig[:, :H] * g_g
        h_new = sig[:, 2 * H:3 * H] * jnp.tanh(c_new)
        if needs_mask:                       # freeze state on padded tail steps
            valid = (chunk_base + t) < seq_len
            h_new = jnp.where(valid, h_new, h)
            c_new = jnp.where(valid, c_new, c)
        out_s[t] = h_new                     # clean (B, H) store to scratch
        return (h_new, h_new.astype(whh.dtype), c_new)

    h_fin, _, c_fin = lax.fori_loop(0, tc, step, carry0,
                                    unroll=True if tc <= 16 else 8)

    # Cross-chunk state written once per chunk (not per step).
    h_s[...] = h_fin
    c_s[...] = c_fin

    # One batch-first block write per chunk (transpose stays in VMEM; no HBM
    # round-trip transpose in the wrapper).
    out_ref[...] = jnp.transpose(out_s[...], (1, 0, 2))

    # Final (h_n, c_n) written only on the last grid step.
    @pl.when(chunk == pl.num_programs(0) - 1)
    def _():
        hn_ref[...] = h_fin
        cn_ref[...] = c_fin


def decoder_forward(tgt, dec_state, encoder_outputs, src_lengths, params,
                    *, time_chunk=None):
    """Pallas forward pass of the PyTorch Decoder (attn=None).

    tgt: (B, T) int32 token ids; dec_state: (h, c) with shape (1, B, H) or
    (2, B, H//2) (folded via reshape_state, like the PyTorch module).
    Returns (outputs (B, T, H) f32, (h_n (1, B, H), c_n (1, B, H)))."""
    del encoder_outputs, src_lengths     # only consumed by attention (None here)

    emb = params["embedding"]            # (V, H), padding_idx row is zero
    _, H = emb.shape
    B, T = tgt.shape

    if dec_state[0].shape[0] == 2:       # state coming from a biLSTM encoder
        dec_state = reshape_state(dec_state)
    h0 = dec_state[0][0].astype(jnp.float32)        # (B, H)
    c0 = dec_state[1][0].astype(jnp.float32)        # (B, H)

    # Time-chunk: multiple of 8 (sublane tile of the (B, tc, H) output block),
    # sized toward tc*B ~ 256 rows for the hoisted MXU projection; T is padded
    # up to a multiple of tc and tail steps are masked in-kernel.
    if time_chunk is None:
        time_chunk = max(8, _round_up(max(256 // max(B, 1), 1), 8))
    tc = _round_up(max(1, min(int(time_chunk), _round_up(T, 8))), 8)
    T_pad = _round_up(T, tc)
    n_chunks = T_pad // tc

    # Embedding gather directly in time-major order (no activation-slab
    # transpose); dropout is identity in eval mode.
    x = jnp.take(emb, tgt.T, axis=0).reshape(T * B, H).astype(jnp.bfloat16)
    if T_pad != T:
        x = jnp.pad(x, ((0, (T_pad - T) * B), (0, 0)))

    # Reorder PyTorch (i, f, g, o) gate columns to (i, f, o, g) so the kernel
    # issues one sigmoid over [:, :3H] and one tanh over [:, 3H:].
    wih = _ifgo_to_ifog(params["wih"], H).astype(jnp.bfloat16)     # (H, 4H)
    whh = _ifgo_to_ifog(params["whh"], H).astype(jnp.bfloat16)     # (H, 4H)
    b = _ifgo_to_ifog(params["b"], H).astype(jnp.float32)          # (1, 4H)

    # VMEM budget from the actual footprint (double-buffered blocks + scratch).
    f32b, bf16b = 4, 2
    footprint = (
        2 * (tc * B * H * bf16b)                       # x chunk (x2 buffers)
        + 2 * (B * tc * H * f32b)                      # output chunk (x2 buffers)
        + 2 * (2 * H * 4 * H * bf16b                   # wih + whh
               + 4 * H * f32b                          # bias
               + 2 * B * H * f32b)                     # h0 + c0
        + 2 * (2 * B * H * f32b)                       # h_n + c_n
        + 2 * B * H * f32b                             # h_s + c_s scratch
        + tc * B * 4 * H * f32b                        # gx_s scratch
        + tc * B * H * f32b                            # out_s scratch
    )
    vmem_limit = int(min(max(2 * footprint, 8 * 1024 * 1024), 48 * 1024 * 1024))

    kernel = functools.partial(_lstm_decoder_kernel, seq_len=T)

    out, h_n, c_n = pl.pallas_call(
        kernel,
        out_shape=(
            jax.ShapeDtypeStruct((B, T_pad, H), jnp.float32),   # lstm outputs
            jax.ShapeDtypeStruct((B, H), jnp.float32),          # h_n
            jax.ShapeDtypeStruct((B, H), jnp.float32),          # c_n
        ),
        grid_spec=pltpu.PrefetchScalarGridSpec(
            num_scalar_prefetch=0,
            grid=(n_chunks,),
            in_specs=[
                pl.BlockSpec((tc * B, H), lambda i: (i, 0)),    # x chunk
                pl.BlockSpec((H, 4 * H), lambda i: (0, 0)),     # W_ih (resident)
                pl.BlockSpec((H, 4 * H), lambda i: (0, 0)),     # W_hh (resident)
                pl.BlockSpec((1, 4 * H), lambda i: (0, 0)),     # bias (resident)
                pl.BlockSpec((B, H), lambda i: (0, 0)),         # h0 (resident)
                pl.BlockSpec((B, H), lambda i: (0, 0)),         # c0 (resident)
            ],
            out_specs=[
                pl.BlockSpec((B, tc, H), lambda i: (0, i, 0)),  # batch-first out
                pl.BlockSpec((B, H), lambda i: (0, 0)),         # h_n (resident)
                pl.BlockSpec((B, H), lambda i: (0, 0)),         # c_n (resident)
            ],
            scratch_shapes=[
                pltpu.VMEM((B, H), jnp.float32),                # carried h
                pltpu.VMEM((B, H), jnp.float32),                # carried c
                pltpu.VMEM((tc * B, 4 * H), jnp.float32),       # projected gates
                pltpu.VMEM((tc, B, H), jnp.float32),            # chunk outputs
            ],
        ),
        compiler_params=pltpu.CompilerParams(
            dimension_semantics=("arbitrary",),                 # sequential recurrence
            vmem_limit_bytes=vmem_limit,
        ),
    )(x, wih, whh, b, h0, c0)

    outputs = out[:, :T, :]                     # drop padded tail steps
    # attention (attn=None) and output dropout (eval mode) are identity here.
    return outputs, (h_n[None], c_n[None])


def make_params(key, tgt_vocab_size, hidden_size, padding_idx):
    keys = jax.random.split(key, 5)
    scale = float(hidden_size) ** -0.5

    def u(k, shape):
        return jax.random.uniform(k, shape, jnp.float32, -scale, scale)

    emb = jax.random.normal(keys[0], (tgt_vocab_size, hidden_size),
                            jnp.float32) * 0.1
    emb = emb.at[padding_idx].set(0.0)        # nn.Embedding padding_idx row

    # PyTorch weight_ih_l0 is (4H, H); stored transposed (H, 4H) for x @ W,
    # in the standard PyTorch gate order (i, f, g, o).
    wih = u(keys[1], (hidden_size, 4 * hidden_size))
    whh = u(keys[2], (hidden_size, 4 * hidden_size))
    b = u(keys[3], (1, 4 * hidden_size)) + u(keys[4], (1, 4 * hidden_size))
    return dict(embedding=emb, wih=wih, whh=whh, b=b)


def _reference_decoder(tgt, dec_state, params):
    """Pure-JAX reference with the same bf16-matmul / f32-state numerics,
    using the standard PyTorch gate order (i, f, g, o)."""
    emb = params["embedding"]
    wih = params["wih"].astype(jnp.bfloat16)
    whh = params["whh"].astype(jnp.bfloat16)
    b = params["b"].astype(jnp.float32)
    if dec_state[0].shape[0] == 2:
        dec_state = reshape_state(dec_state)
    h = dec_state[0][0].astype(jnp.float32)
    c = dec_state[1][0].astype(jnp.float32)
    H = h.shape[1]
    x = jnp.take(emb, tgt, axis=0).astype(jnp.bfloat16)     # (B, T, H)
    outs = []
    for t in range(tgt.shape[1]):
        gates = (jnp.dot(x[:, t, :], wih, preferred_element_type=jnp.float32)
                 + jnp.dot(h.astype(jnp.bfloat16), whh,
                           preferred_element_type=jnp.float32)
                 + b)
        i_g = jax.nn.sigmoid(gates[:, 0:H])
        f_g = jax.nn.sigmoid(gates[:, H:2 * H])
        g_g = jnp.tanh(gates[:, 2 * H:3 * H])
        o_g = jax.nn.sigmoid(gates[:, 3 * H:4 * H])
        c = f_g * c + i_g * g_g
        h = o_g * jnp.tanh(c)
        outs.append(h)
    return jnp.stack(outs, axis=1), (h[None], c[None])


if __name__ == "__main__":
    hidden_size = 32
    tgt_vocab_size = 20
    padding_idx = 0
    B, T = 8, 12         # B=8 fills the f32 sublane tile; T=12 with tc=8
    S = 10               # exercises multi-chunk state carry + tail-step masking

    key = jax.random.PRNGKey(0)
    k_par, k_tgt, k_h, k_c, k_enc = jax.random.split(key, 5)
    params = make_params(k_par, tgt_vocab_size, hidden_size, padding_idx)

    tgt = jax.random.randint(k_tgt, (B, T), 1, tgt_vocab_size, dtype=jnp.int32)
    # Encoder-style state (num_directions=2, B, hidden//2); Decoder.forward
    # folds it to (1, B, hidden) via reshape_state, like the PyTorch module.
    h0 = jax.random.normal(k_h, (2, B, hidden_size // 2), jnp.float32) * 0.1
    c0 = jax.random.normal(k_c, (2, B, hidden_size // 2), jnp.float32) * 0.1
    encoder_outputs = jax.random.normal(k_enc, (B, S, hidden_size), jnp.float32)
    src_lengths = jnp.full((B,), S, dtype=jnp.int32)

    outputs, (h_n, c_n) = decoder_forward(
        tgt, (h0, c0), encoder_outputs, src_lengths, params, time_chunk=8)
    jax.block_until_ready((outputs, h_n, c_n))

    assert outputs.shape == (B, T, hidden_size)
    assert h_n.shape == (1, B, hidden_size)
    assert c_n.shape == (1, B, hidden_size)

    ref_out, (ref_h, ref_c) = _reference_decoder(tgt, (h0, c0), params)
    assert jnp.allclose(outputs, ref_out, atol=1e-2, rtol=1e-2)
    assert jnp.allclose(h_n, ref_h, atol=1e-2, rtol=1e-2)
    assert jnp.allclose(c_n, ref_c, atol=1e-2, rtol=1e-2)

    print("KERNEL_OK")
</pallas_src>

<mosaic_0001>
module attributes {stable_mosaic.version = 11 : i64} {
  func.func @_lstm_decoder_kernel(%arg0: i32, %arg1: memref<64x32xbf16, #tpu.memory_space<vmem>>, %arg2: memref<32x128xbf16, #tpu.memory_space<vmem>>, %arg3: memref<32x128xbf16, #tpu.memory_space<vmem>>, %arg4: memref<1x128xf32, #tpu.memory_space<vmem>>, %arg5: memref<8x32xf32, #tpu.memory_space<vmem>>, %arg6: memref<8x32xf32, #tpu.memory_space<vmem>>, %arg7: memref<8x8x32xf32, #tpu.memory_space<vmem>>, %arg8: memref<8x32xf32, #tpu.memory_space<vmem>>, %arg9: memref<8x32xf32, #tpu.memory_space<vmem>>, %arg10: memref<8x32xf32, #tpu.memory_space<vmem>>, %arg11: memref<8x32xf32, #tpu.memory_space<vmem>>, %arg12: memref<64x128xf32, #tpu.memory_space<vmem>>, %arg13: memref<8x8x32xf32, #tpu.memory_space<vmem>>) attributes {dimension_semantics = [#tpu.dimension_semantics<arbitrary>], iteration_bounds = array<i64: 2>, scalar_prefetch = 0 : i64, scratch_operands = 4 : i64, tpu.core_type = #tpu.core_type<tc>, window_params = [{transform_indices = @transform_0, window_bounds = array<i64: 64, 32>}, {pipeline_mode = #tpu.pipeline_mode<synchronous>, transform_indices = @transform_1, window_bounds = array<i64: 32, 128>}, {pipeline_mode = #tpu.pipeline_mode<synchronous>, transform_indices = @transform_2, window_bounds = array<i64: 32, 128>}, {pipeline_mode = #tpu.pipeline_mode<synchronous>, transform_indices = @transform_3, window_bounds = array<i64: 1, 128>}, {pipeline_mode = #tpu.pipeline_mode<synchronous>, transform_indices = @transform_4, window_bounds = array<i64: 8, 32>}, {pipeline_mode = #tpu.pipeline_mode<synchronous>, transform_indices = @transform_5, window_bounds = array<i64: 8, 32>}, {transform_indices = @transform_6, window_bounds = array<i64: 8, 8, 32>}, {pipeline_mode = #tpu.pipeline_mode<synchronous>, transform_indices = @transform_7, window_bounds = array<i64: 8, 32>}, {pipeline_mode = #tpu.pipeline_mode<synchronous>, transform_indices = @transform_8, window_bounds = array<i64: 8, 32>}]} {
    %c0_i32 = arith.constant 0 : i32
    %0 = arith.cmpi eq, %arg0, %c0_i32 : i32
    %1 = arith.extui %0 : i1 to i32
    %c0_i32_0 = arith.constant 0 : i32
    %2 = arith.cmpi ne, %1, %c0_i32_0 : i32
    scf.if %2 {
      %c0_83 = arith.constant 0 : index
      %c0_84 = arith.constant 0 : index
      %271 = vector.load %arg5[%c0_83, %c0_84] : memref<8x32xf32, #tpu.memory_space<vmem>>, vector<8x32xf32>
      %c0_85 = arith.constant 0 : index
      %c0_86 = arith.constant 0 : index
      %272 = vector.load %arg10[%c0_85, %c0_86] : memref<8x32xf32, #tpu.memory_space<vmem>>, vector<8x32xf32>
      tpu.vector_store %arg10[%c0_85, %c0_86], %271 {strides = array<i32>} : memref<8x32xf32, #tpu.memory_space<vmem>>, vector<8x32xf32>,
      %c0_87 = arith.constant 0 : index
      %c0_88 = arith.constant 0 : index
      %273 = vector.load %arg6[%c0_87, %c0_88] : memref<8x32xf32, #tpu.memory_space<vmem>>, vector<8x32xf32>
      %c0_89 = arith.constant 0 : index
      %c0_90 = arith.constant 0 : index
      %274 = vector.load %arg11[%c0_89, %c0_90] : memref<8x32xf32, #tpu.memory_space<vmem>>, vector<8x32xf32>
      tpu.vector_store %arg11[%c0_89, %c0_90], %273 {strides = array<i32>} : memref<8x32xf32, #tpu.memory_space<vmem>>, vector<8x32xf32>,
    } else {
    }
    %c0 = arith.constant 0 : index
    %c0_1 = arith.constant 0 : index
    %3 = vector.load %arg1[%c0, %c0_1] : memref<64x32xbf16, #tpu.memory_space<vmem>>, vector<64x32xbf16>
    %c0_2 = arith.constant 0 : index
    %c0_3 = arith.constant 0 : index
    %4 = vector.load %arg2[%c0_2, %c0_3] : memref<32x128xbf16, #tpu.memory_space<vmem>>, vector<32x128xbf16>
    %cst = arith.constant dense<0.000000e+00> : vector<64x128xf32>
    %5 = tpu.matmul %3, %4, %cst {dimension_numbers = #tpu.dot_dimension_numbers<[1], [0], [0], [1], [0, 0, 1, 1], [], []>} : vector<64x32xbf16>, vector<32x128xbf16>, vector<64x128xf32> -> vector<64x128xf32>
    %c0_4 = arith.constant 0 : index
    %c0_5 = arith.constant 0 : index
    %6 = vector.load %arg4[%c0_4, %c0_5] : memref<1x128xf32, #tpu.memory_space<vmem>>, vector<1x128xf32>
    %7 = vector.broadcast %6 : vector<1x128xf32> to vector<64x128xf32>
    %8 = arith.addf %5, %7 : vector<64x128xf32>
    %c0_6 = arith.constant 0 : index
    %c0_7 = arith.constant 0 : index
    %9 = vector.load %arg12[%c0_6, %c0_7] : memref<64x128xf32, #tpu.memory_space<vmem>>, vector<64x128xf32>
    tpu.vector_store %arg12[%c0_6, %c0_7], %8 {strides = array<i32>} : memref<64x128xf32, #tpu.memory_space<vmem>>, vector<64x128xf32>,
    %c0_8 = arith.constant 0 : index
    %c0_9 = arith.constant 0 : index
    %10 = vector.load %arg3[%c0_8, %c0_9] : memref<32x128xbf16, #tpu.memory_space<vmem>>, vector<32x128xbf16>
    %c8_i32 = arith.constant 8 : i32
    %11 = arith.muli %arg0, %c8_i32 : i32
    %c0_10 = arith.constant 0 : index
    %c0_11 = arith.constant 0 : index
    %12 = vector.load %arg10[%c0_10, %c0_11] : memref<8x32xf32, #tpu.memory_space<vmem>>, vector<8x32xf32>
    %13 = arith.truncf %12 : vector<8x32xf32> to vector<8x32xbf16>
    %c0_12 = arith.constant 0 : index
    %c0_13 = arith.constant 0 : index
    %14 = vector.load %arg11[%c0_12, %c0_13] : memref<8x32xf32, #tpu.memory_space<vmem>>, vector<8x32xf32>
    %c0_i32_14 = arith.constant 0 : i32
    %c8_i32_15 = arith.constant 8 : i32
    %15 = arith.muli %c0_i32_14, %c8_i32_15 : i32
    %16 = tpu.assume_multiple %15, 8 : i32
    %17 = arith.index_cast %16 : i32 to index
    %c0_16 = arith.constant 0 : index
    %18 = vector.load %arg12[%17, %c0_16] : memref<64x128xf32, #tpu.memory_space<vmem>>, vector<8x128xf32>
    %cst_17 = arith.constant dense<0.000000e+00> : vector<8x128xf32>
    %19 = tpu.matmul %13, %10, %cst_17 {dimension_numbers = #tpu.dot_dimension_numbers<[1], [0], [0], [1], [0, 0, 1, 1], [], []>} : vector<8x32xbf16>, vector<32x128xbf16>, vector<8x128xf32> -> vector<8x128xf32>
    %20 = arith.addf %18, %19 : vector<8x128xf32>
    %21 = vector.extract_strided_slice %20 {offsets = [0, 0], sizes = [8, 96], strides = [1, 1]} : vector<8x128xf32> to vector<8x96xf32>
    %22 = arith.negf %21 : vector<8x96xf32>
    %23 = math.exp %22 : vector<8x96xf32>
    %cst_18 = arith.constant 1.000000e+00 : f32
    %24 = vector.broadcast %cst_18 : f32 to vector<8x96xf32>
    %25 = arith.addf %24, %23 : vector<8x96xf32>
    %26 = arith.divf %24, %25 : vector<8x96xf32>
    %27 = vector.extract_strided_slice %20 {offsets = [0, 96], sizes = [8, 32], strides = [1, 1]} : vector<8x128xf32> to vector<8x32xf32>
    %28 = math.tanh %27 : vector<8x32xf32>
    %29 = vector.extract_strided_slice %26 {offsets = [0, 32], sizes = [8, 32], strides = [1, 1]} : vector<8x96xf32> to vector<8x32xf32>
    %30 = arith.mulf %29, %14 : vector<8x32xf32>
    %31 = vector.extract_strided_slice %26 {offsets = [0, 0], sizes = [8, 32], strides = [1, 1]} : vector<8x96xf32> to vector<8x32xf32>
    %32 = arith.mulf %31, %28 : vector<8x32xf32>
    %33 = arith.addf %30, %32 : vector<8x32xf32>
    %34 = vector.extract_strided_slice %26 {offsets = [0, 64], sizes = [8, 32], strides = [1, 1]} : vector<8x96xf32> to vector<8x32xf32>
    %35 = math.tanh %33 : vector<8x32xf32>
    %36 = arith.mulf %34, %35 : vector<8x32xf32>
    %37 = arith.addi %11, %c0_i32_14 : i32
    %c12_i32 = arith.constant 12 : i32
    %38 = arith.cmpi slt, %37, %c12_i32 : i32
    %39 = arith.select %38, %36, %12 : vector<8x32xf32>
    %40 = arith.select %38, %33, %14 : vector<8x32xf32>
    %41 = arith.index_cast %c0_i32_14 : i32 to index
    %c0_19 = arith.constant 0 : index
    %c0_20 = arith.constant 0 : index
    %42 = vector.load %arg13[%41, %c0_19, %c0_20] : memref<8x8x32xf32, #tpu.memory_space<vmem>>, vector<1x8x32xf32>
    %43 = vector.shape_cast %42 : vector<1x8x32xf32> to vector<8x32xf32>
    %44 = vector.shape_cast %39 : vector<8x32xf32> to vector<1x8x32xf32>
    tpu.vector_store %arg13[%41, %c0_19, %c0_20], %44 {strides = array<i32>} : memref<8x8x32xf32, #tpu.memory_space<vmem>>, vector<1x8x32xf32>,
    %45 = arith.truncf %39 : vector<8x32xf32> to vector<8x32xbf16>
    %c1_i32 = arith.constant 1 : i32
    %c8_i32_21 = arith.constant 8 : i32
    %46 = arith.muli %c1_i32, %c8_i32_21 : i32
    %47 = tpu.assume_multiple %46, 8 : i32
    %48 = arith.index_cast %47 : i32 to index
    %c0_22 = arith.constant 0 : index
    %49 = vector.load %arg12[%48, %c0_22] : memref<64x128xf32, #tpu.memory_space<vmem>>, vector<8x128xf32>
    %cst_23 = arith.constant dense<0.000000e+00> : vector<8x128xf32>
    %50 = tpu.matmul %45, %10, %cst_23 {dimension_numbers = #tpu.dot_dimension_numbers<[1], [0], [0], [1], [0, 0, 1, 1], [], []>} : vector<8x32xbf16>, vector<32x128xbf16>, vector<8x128xf32> -> vector<8x128xf32>
    %51 = arith.addf %49, %50 : vector<8x128xf32>
    %52 = vector.extract_strided_slice %51 {offsets = [0, 0], sizes = [8, 96], strides = [1, 1]} : vector<8x128xf32> to vector<8x96xf32>
    %53 = arith.negf %52 : vector<8x96xf32>
    %54 = math.exp %53 : vector<8x96xf32>
    %cst_24 = arith.constant 1.000000e+00 : f32
    %55 = vector.broadcast %cst_24 : f32 to vector<8x96xf32>
    %56 = arith.addf %55, %54 : vector<8x96xf32>
    %57 = arith.divf %55, %56 : vector<8x96xf32>
    %58 = vector.extract_strided_slice %51 {offsets = [0, 96], sizes = [8, 32], strides = [1, 1]} : vector<8x128xf32> to vector<8x32xf32>
    %59 = math.tanh %58 : vector<8x32xf32>
    %60 = vector.extract_strided_slice %57 {offsets = [0, 32], sizes = [8, 32], strides = [1, 1]} : vector<8x96xf32> to vector<8x32xf32>
    %61 = arith.mulf %60, %40 : vector<8x32xf32>
    %62 = vector.extract_strided_slice %57 {offsets = [0, 0], sizes = [8, 32], strides = [1, 1]} : vector<8x96xf32> to vector<8x32xf32>
    %63 = arith.mulf %62, %59 : vector<8x32xf32>
    %64 = arith.addf %61, %63 : vector<8x32xf32>
    %65 = vector.extract_strided_slice %57 {offsets = [0, 64], sizes = [8, 32], strides = [1, 1]} : vector<8x96xf32> to vector<8x32xf32>
    %66 = math.tanh %64 : vector<8x32xf32>
    %67 = arith.mulf %65, %66 : vector<8x32xf32>
    %68 = arith.addi %11, %c1_i32 : i32
    %c12_i32_25 = arith.constant 12 : i32
    %69 = arith.cmpi slt, %68, %c12_i32_25 : i32
    %70 = arith.select %69, %67, %39 : vector<8x32xf32>
    %71 = arith.select %69, %64, %40 : vector<8x32xf32>
    %72 = arith.index_cast %c1_i32 : i32 to index
    %c0_26 = arith.constant 0 : index
    %c0_27 = arith.constant 0 : index
    %73 = vector.load %arg13[%72, %c0_26, %c0_27] : memref<8x8x32xf32, #tpu.memory_space<vmem>>, vector<1x8x32xf32>
    %74 = vector.shape_cast %73 : vector<1x8x32xf32> to vector<8x32xf32>
    %75 = vector.shape_cast %70 : vector<8x32xf32> to vector<1x8x32xf32>
    tpu.vector_store %arg13[%72, %c0_26, %c0_27], %75 {strides = array<i32>} : memref<8x8x32xf32, #tpu.memory_space<vmem>>, vector<1x8x32xf32>,
    %76 = arith.truncf %70 : vector<8x32xf32> to vector<8x32xbf16>
    %c2_i32 = arith.constant 2 : i32
    %c8_i32_28 = arith.constant 8 : i32
    %77 = arith.muli %c2_i32, %c8_i32_28 : i32
    %78 = tpu.assume_multiple %77, 8 : i32
    %79 = arith.index_cast %78 : i32 to index
    %c0_29 = arith.constant 0 : index
    %80 = vector.load %arg12[%79, %c0_29] : memref<64x128xf32, #tpu.memory_space<vmem>>, vector<8x128xf32>
    %cst_30 = arith.constant dense<0.000000e+00> : vector<8x128xf32>
    %81 = tpu.matmul %76, %10, %cst_30 {dimension_numbers = #tpu.dot_dimension_numbers<[1], [0], [0], [1], [0, 0, 1, 1], [], []>} : vector<8x32xbf16>, vector<32x128xbf16>, vector<8x128xf32> -> vector<8x128xf32>
    %82 = arith.addf %80, %81 : vector<8x128xf32>
    %83 = vector.extract_strided_slice %82 {offsets = [0, 0], sizes = [8, 96], strides = [1, 1]} : vector<8x128xf32> to vector<8x96xf32>
    %84 = arith.negf %83 : vector<8x96xf32>
    %85 = math.exp %84 : vector<8x96xf32>
    %cst_31 = arith.constant 1.000000e+00 : f32
    %86 = vector.broadcast %cst_31 : f32 to vector<8x96xf32>
    %87 = arith.addf %86, %85 : vector<8x96xf32>
    %88 = arith.divf %86, %87 : vector<8x96xf32>
    %89 = vector.extract_strided_slice %82 {offsets = [0, 96], sizes = [8, 32], strides = [1, 1]} : vector<8x128xf32> to vector<8x32xf32>
    %90 = math.tanh %89 : vector<8x32xf32>
    %91 = vector.extract_strided_slice %88 {offsets = [0, 32], sizes = [8, 32], strides = [1, 1]} : vector<8x96xf32> to vector<8x32xf32>
    %92 = arith.mulf %91, %71 : vector<8x32xf32>
    %93 = vector.extract_strided_slice %88 {offsets = [0, 0], sizes = [8, 32], strides = [1, 1]} : vector<8x96xf32> to vector<8x32xf32>
    %94 = arith.mulf %93, %90 : vector<8x32xf32>
    %95 = arith.addf %92, %94 : vector<8x32xf32>
    %96 = vector.extract_strided_slice %88 {offsets = [0, 64], sizes = [8, 32], strides = [1, 1]} : vector<8x96xf32> to vector<8x32xf32>
    %97 = math.tanh %95 : vector<8x32xf32>
    %98 = arith.mulf %96, %97 : vector<8x32xf32>
    %99 = arith.addi %11, %c2_i32 : i32
    %c12_i32_32 = arith.constant 12 : i32
    %100 = arith.cmpi slt, %99, %c12_i32_32 : i32
    %101 = arith.select %100, %98, %70 : vector<8x32xf32>
    %102 = arith.select %100, %95, %71 : vector<8x32xf32>
    %103 = arith.index_cast %c2_i32 : i32 to index
    %c0_33 = arith.constant 0 : index
    %c0_34 = arith.constant 0 : index
    %104 = vector.load %arg13[%103, %c0_33, %c0_34] : memref<8x8x32xf32, #tpu.memory_space<vmem>>, vector<1x8x32xf32>
    %105 = vector.shape_cast %104 : vector<1x8x32xf32> to vector<8x32xf32>
    %106 = vector.shape_cast %101 : vector<8x32xf32> to vector<1x8x32xf32>
    tpu.vector_store %arg13[%103, %c0_33, %c0_34], %106 {strides = array<i32>} : memref<8x8x32xf32, #tpu.memory_space<vmem>>, vector<1x8x32xf32>,
    %107 = arith.truncf %101 : vector<8x32xf32> to vector<8x32xbf16>
    %c3_i32 = arith.constant 3 : i32
    %c8_i32_35 = arith.constant 8 : i32
    %108 = arith.muli %c3_i32, %c8_i32_35 : i32
    %109 = tpu.assume_multiple %108, 8 : i32
    %110 = arith.index_cast %109 : i32 to index
    %c0_36 = arith.constant 0 : index
    %111 = vector.load %arg12[%110, %c0_36] : memref<64x128xf32, #tpu.memory_space<vmem>>, vector<8x128xf32>
    %cst_37 = arith.constant dense<0.000000e+00> : vector<8x128xf32>
    %112 = tpu.matmul %107, %10, %cst_37 {dimension_numbers = #tpu.dot_dimension_numbers<[1], [0], [0], [1], [0, 0, 1, 1], [], []>} : vector<8x32xbf16>, vector<32x128xbf16>, vector<8x128xf32> -> vector<8x128xf32>
    %113 = arith.addf %111, %112 : vector<8x128xf32>
    %114 = vector.extract_strided_slice %113 {offsets = [0, 0], sizes = [8, 96], strides = [1, 1]} : vector<8x128xf32> to vector<8x96xf32>
    %115 = arith.negf %114 : vector<8x96xf32>
    %116 = math.exp %115 : vector<8x96xf32>
    %cst_38 = arith.constant 1.000000e+00 : f32
    %117 = vector.broadcast %cst_38 : f32 to vector<8x96xf32>
    %118 = arith.addf %117, %116 : vector<8x96xf32>
    %119 = arith.divf %117, %118 : vector<8x96xf32>
    %120 = vector.extract_strided_slice %113 {offsets = [0, 96], sizes = [8, 32], strides = [1, 1]} : vector<8x128xf32> to vector<8x32xf32>
    %121 = math.tanh %120 : vector<8x32xf32>
    %122 = vector.extract_strided_slice %119 {offsets = [0, 32], sizes = [8, 32], strides = [1, 1]} : vector<8x96xf32> to vector<8x32xf32>
    %123 = arith.mulf %122, %102 : vector<8x32xf32>
    %124 = vector.extract_strided_slice %119 {offsets = [0, 0], sizes = [8, 32], strides = [1, 1]} : vector<8x96xf32> to vector<8x32xf32>
    %125 = arith.mulf %124, %121 : vector<8x32xf32>
    %126 = arith.addf %123, %125 : vector<8x32xf32>
    %127 = vector.extract_strided_slice %119 {offsets = [0, 64], sizes = [8, 32], strides = [1, 1]} : vector<8x96xf32> to vector<8x32xf32>
    %128 = math.tanh %126 : vector<8x32xf32>
    %129 = arith.mulf %127, %128 : vector<8x32xf32>
    %130 = arith.addi %11, %c3_i32 : i32
    %c12_i32_39 = arith.constant 12 : i32
    %131 = arith.cmpi slt, %130, %c12_i32_39 : i32
    %132 = arith.select %131, %129, %101 : vector<8x32xf32>
    %133 = arith.select %131, %126, %102 : vector<8x32xf32>
    %134 = arith.index_cast %c3_i32 : i32 to index
    %c0_40 = arith.constant 0 : index
    %c0_41 = arith.constant 0 : index
    %135 = vector.load %arg13[%134, %c0_40, %c0_41] : memref<8x8x32xf32, #tpu.memory_space<vmem>>, vector<1x8x32xf32>
    %136 = vector.shape_cast %135 : vector<1x8x32xf32> to vector<8x32xf32>
    %137 = vector.shape_cast %132 : vector<8x32xf32> to vector<1x8x32xf32>
    tpu.vector_store %arg13[%134, %c0_40, %c0_41], %137 {strides = array<i32>} : memref<8x8x32xf32, #tpu.memory_space<vmem>>, vector<1x8x32xf32>,
    %138 = arith.truncf %132 : vector<8x32xf32> to vector<8x32xbf16>
    %c4_i32 = arith.constant 4 : i32
    %c8_i32_42 = arith.constant 8 : i32
    %139 = arith.muli %c4_i32, %c8_i32_42 : i32
    %140 = tpu.assume_multiple %139, 8 : i32
    %141 = arith.index_cast %140 : i32 to index
    %c0_43 = arith.constant 0 : index
    %142 = vector.load %arg12[%141, %c0_43] : memref<64x128xf32, #tpu.memory_space<vmem>>, vector<8x128xf32>
    %cst_44 = arith.constant dense<0.000000e+00> : vector<8x128xf32>
    %143 = tpu.matmul %138, %10, %cst_44 {dimension_numbers = #tpu.dot_dimension_numbers<[1], [0], [0], [1], [0, 0, 1, 1], [], []>} : vector<8x32xbf16>, vector<32x128xbf16>, vector<8x128xf32> -> vector<8x128xf32>
    %144 = arith.addf %142, %143 : vector<8x128xf32>
    %145 = vector.extract_strided_slice %144 {offsets = [0, 0], sizes = [8, 96], strides = [1, 1]} : vector<8x128xf32> to vector<8x96xf32>
    %146 = arith.negf %145 : vector<8x96xf32>
    %147 = math.exp %146 : vector<8x96xf32>
    %cst_45 = arith.constant 1.000000e+00 : f32
    %148 = vector.broadcast %cst_45 : f32 to vector<8x96xf32>
    %149 = arith.addf %148, %147 : vector<8x96xf32>
    %150 = arith.divf %148, %149 : vector<8x96xf32>
    %151 = vector.extract_strided_slice %144 {offsets = [0, 96], sizes = [8, 32], strides = [1, 1]} : vector<8x128xf32> to vector<8x32xf32>
    %152 = math.tanh %151 : vector<8x32xf32>
    %153 = vector.extract_strided_slice %150 {offsets = [0, 32], sizes = [8, 32], strides = [1, 1]} : vector<8x96xf32> to vector<8x32xf32>
    %154 = arith.mulf %153, %133 : vector<8x32xf32>
    %155 = vector.extract_strided_slice %150 {offsets = [0, 0], sizes = [8, 32], strides = [1, 1]} : vector<8x96xf32> to vector<8x32xf32>
    %156 = arith.mulf %155, %152 : vector<8x32xf32>
    %157 = arith.addf %154, %156 : vector<8x32xf32>
    %158 = vector.extract_strided_slice %150 {offsets = [0, 64], sizes = [8, 32], strides = [1, 1]} : vector<8x96xf32> to vector<8x32xf32>
    %159 = math.tanh %157 : vector<8x32xf32>
    %160 = arith.mulf %158, %159 : vector<8x32xf32>
    %161 = arith.addi %11, %c4_i32 : i32
    %c12_i32_46 = arith.constant 12 : i32
    %162 = arith.cmpi slt, %161, %c12_i32_46 : i32
    %163 = arith.select %162, %160, %132 : vector<8x32xf32>
    %164 = arith.select %162, %157, %133 : vector<8x32xf32>
    %165 = arith.index_cast %c4_i32 : i32 to index
    %c0_47 = arith.constant 0 : index
    %c0_48 = arith.constant 0 : index
    %166 = vector.load %arg13[%165, %c0_47, %c0_48] : memref<8x8x32xf32, #tpu.memory_space<vmem>>, vector<1x8x32xf32>
    %167 = vector.shape_cast %166 : vector<1x8x32xf32> to vector<8x32xf32>
    %168 = vector.shape_cast %163 : vector<8x32xf32> to vector<1x8x32xf32>
    tpu.vector_store %arg13[%165, %c0_47, %c0_48], %168 {strides = array<i32>} : memref<8x8x32xf32, #tpu.memory_space<vmem>>, vector<1x8x32xf32>,
    %169 = arith.truncf %163 : vector<8x32xf32> to vector<8x32xbf16>
    %c5_i32 = arith.constant 5 : i32
    %c8_i32_49 = arith.constant 8 : i32
    %170 = arith.muli %c5_i32, %c8_i32_49 : i32
    %171 = tpu.assume_multiple %170, 8 : i32
    %172 = arith.index_cast %171 : i32 to index
    %c0_50 = arith.constant 0 : index
    %173 = vector.load %arg12[%172, %c0_50] : memref<64x128xf32, #tpu.memory_space<vmem>>, vector<8x128xf32>
    %cst_51 = arith.constant dense<0.000000e+00> : vector<8x128xf32>
    %174 = tpu.matmul %169, %10, %cst_51 {dimension_numbers = #tpu.dot_dimension_numbers<[1], [0], [0], [1], [0, 0, 1, 1], [], []>} : vector<8x32xbf16>, vector<32x128xbf16>, vector<8x128xf32> -> vector<8x128xf32>
    %175 = arith.addf %173, %174 : vector<8x128xf32>
    %176 = vector.extract_strided_slice %175 {offsets = [0, 0], sizes = [8, 96], strides = [1, 1]} : vector<8x128xf32> to vector<8x96xf32>
    %177 = arith.negf %176 : vector<8x96xf32>
    %178 = math.exp %177 : vector<8x96xf32>
    %cst_52 = arith.constant 1.000000e+00 : f32
    %179 = vector.broadcast %cst_52 : f32 to vector<8x96xf32>
    %180 = arith.addf %179, %178 : vector<8x96xf32>
    %181 = arith.divf %179, %180 : vector<8x96xf32>
    %182 = vector.extract_strided_slice %175 {offsets = [0, 96], sizes = [8, 32], strides = [1, 1]} : vector<8x128xf32> to vector<8x32xf32>
    %183 = math.tanh %182 : vector<8x32xf32>
    %184 = vector.extract_strided_slice %181 {offsets = [0, 32], sizes = [8, 32], strides = [1, 1]} : vector<8x96xf32> to vector<8x32xf32>
    %185 = arith.mulf %184, %164 : vector<8x32xf32>
    %186 = vector.extract_strided_slice %181 {offsets = [0, 0], sizes = [8, 32], strides = [1, 1]} : vector<8x96xf32> to vector<8x32xf32>
    %187 = arith.mulf %186, %183 : vector<8x32xf32>
    %188 = arith.addf %185, %187 : vector<8x32xf32>
    %189 = vector.extract_strided_slice %181 {offsets = [0, 64], sizes = [8, 32], strides = [1, 1]} : vector<8x96xf32> to vector<8x32xf32>
    %190 = math.tanh %188 : vector<8x32xf32>
    %191 = arith.mulf %189, %190 : vector<8x32xf32>
    %192 = arith.addi %11, %c5_i32 : i32
    %c12_i32_53 = arith.constant 12 : i32
    %193 = arith.cmpi slt, %192, %c12_i32_53 : i32
    %194 = arith.select %193, %191, %163 : vector<8x32xf32>
    %195 = arith.select %193, %188, %164 : vector<8x32xf32>
    %196 = arith.index_cast %c5_i32 : i32 to index
    %c0_54 = arith.constant 0 : index
    %c0_55 = arith.constant 0 : index
    %197 = vector.load %arg13[%196, %c0_54, %c0_55] : memref<8x8x32xf32, #tpu.memory_space<vmem>>, vector<1x8x32xf32>
    %198 = vector.shape_cast %197 : vector<1x8x32xf32> to vector<8x32xf32>
    %199 = vector.shape_cast %194 : vector<8x32xf32> to vector<1x8x32xf32>
    tpu.vector_store %arg13[%196, %c0_54, %c0_55], %199 {strides = array<i32>} : memref<8x8x32xf32, #tpu.memory_space<vmem>>, vector<1x8x32xf32>,
    %200 = arith.truncf %194 : vector<8x32xf32> to vector<8x32xbf16>
    %c6_i32 = arith.constant 6 : i32
    %c8_i32_56 = arith.constant 8 : i32
    %201 = arith.muli %c6_i32, %c8_i32_56 : i32
    %202 = tpu.assume_multiple %201, 8 : i32
    %203 = arith.index_cast %202 : i32 to index
    %c0_57 = arith.constant 0 : index
    %204 = vector.load %arg12[%203, %c0_57] : memref<64x128xf32, #tpu.memory_space<vmem>>, vector<8x128xf32>
    %cst_58 = arith.constant dense<0.000000e+00> : vector<8x128xf32>
    %205 = tpu.matmul %200, %10, %cst_58 {dimension_numbers = #tpu.dot_dimension_numbers<[1], [0], [0], [1], [0, 0, 1, 1], [], []>} : vector<8x32xbf16>, vector<32x128xbf16>, vector<8x128xf32> -> vector<8x128xf32>
    %206 = arith.addf %204, %205 : vector<8x128xf32>
    %207 = vector.extract_strided_slice %206 {offsets = [0, 0], sizes = [8, 96], strides = [1, 1]} : vector<8x128xf32> to vector<8x96xf32>
    %208 = arith.negf %207 : vector<8x96xf32>
    %209 = math.exp %208 : vector<8x96xf32>
    %cst_59 = arith.constant 1.000000e+00 : f32
    %210 = vector.broadcast %cst_59 : f32 to vector<8x96xf32>
    %211 = arith.addf %210, %209 : vector<8x96xf32>
    %212 = arith.divf %210, %211 : vector<8x96xf32>
    %213 = vector.extract_strided_slice %206 {offsets = [0, 96], sizes = [8, 32], strides = [1, 1]} : vector<8x128xf32> to vector<8x32xf32>
    %214 = math.tanh %213 : vector<8x32xf32>
    %215 = vector.extract_strided_slice %212 {offsets = [0, 32], sizes = [8, 32], strides = [1, 1]} : vector<8x96xf32> to vector<8x32xf32>
    %216 = arith.mulf %215, %195 : vector<8x32xf32>
    %217 = vector.extract_strided_slice %212 {offsets = [0, 0], sizes = [8, 32], strides = [1, 1]} : vector<8x96xf32> to vector<8x32xf32>
    %218 = arith.mulf %217, %214 : vector<8x32xf32>
    %219 = arith.addf %216, %218 : vector<8x32xf32>
    %220 = vector.extract_strided_slice %212 {offsets = [0, 64], sizes = [8, 32], strides = [1, 1]} : vector<8x96xf32> to vector<8x32xf32>
    %221 = math.tanh %219 : vector<8x32xf32>
    %222 = arith.mulf %220, %221 : vector<8x32xf32>
    %223 = arith.addi %11, %c6_i32 : i32
    %c12_i32_60 = arith.constant 12 : i32
    %224 = arith.cmpi slt, %223, %c12_i32_60 : i32
    %225 = arith.select %224, %222, %194 : vector<8x32xf32>
    %226 = arith.select %224, %219, %195 : vector<8x32xf32>
    %227 = arith.index_cast %c6_i32 : i32 to index
    %c0_61 = arith.constant 0 : index
    %c0_62 = arith.constant 0 : index
    %228 = vector.load %arg13[%227, %c0_61, %c0_62] : memref<8x8x32xf32, #tpu.memory_space<vmem>>, vector<1x8x32xf32>
    %229 = vector.shape_cast %228 : vector<1x8x32xf32> to vector<8x32xf32>
    %230 = vector.shape_cast %225 : vector<8x32xf32> to vector<1x8x32xf32>
    tpu.vector_store %arg13[%227, %c0_61, %c0_62], %230 {strides = array<i32>} : memref<8x8x32xf32, #tpu.memory_space<vmem>>, vector<1x8x32xf32>,
    %231 = arith.truncf %225 : vector<8x32xf32> to vector<8x32xbf16>
    %c7_i32 = arith.constant 7 : i32
    %c8_i32_63 = arith.constant 8 : i32
    %232 = arith.muli %c7_i32, %c8_i32_63 : i32
    %233 = tpu.assume_multiple %232, 8 : i32
    %234 = arith.index_cast %233 : i32 to index
    %c0_64 = arith.constant 0 : index
    %235 = vector.load %arg12[%234, %c0_64] : memref<64x128xf32, #tpu.memory_space<vmem>>, vector<8x128xf32>
    %cst_65 = arith.constant dense<0.000000e+00> : vector<8x128xf32>
    %236 = tpu.matmul %231, %10, %cst_65 {dimension_numbers = #tpu.dot_dimension_numbers<[1], [0], [0], [1], [0, 0, 1, 1], [], []>} : vector<8x32xbf16>, vector<32x128xbf16>, vector<8x128xf32> -> vector<8x128xf32>
    %237 = arith.addf %235, %236 : vector<8x128xf32>
    %238 = vector.extract_strided_slice %237 {offsets = [0, 0], sizes = [8, 96], strides = [1, 1]} : vector<8x128xf32> to vector<8x96xf32>
    %239 = arith.negf %238 : vector<8x96xf32>
    %240 = math.exp %239 : vector<8x96xf32>
    %cst_66 = arith.constant 1.000000e+00 : f32
    %241 = vector.broadcast %cst_66 : f32 to vector<8x96xf32>
    %242 = arith.addf %241, %240 : vector<8x96xf32>
    %243 = arith.divf %241, %242 : vector<8x96xf32>
    %244 = vector.extract_strided_slice %237 {offsets = [0, 96], sizes = [8, 32], strides = [1, 1]} : vector<8x128xf32> to vector<8x32xf32>
    %245 = math.tanh %244 : vector<8x32xf32>
    %246 = vector.extract_strided_slice %243 {offsets = [0, 32], sizes = [8, 32], strides = [1, 1]} : vector<8x96xf32> to vector<8x32xf32>
    %247 = arith.mulf %246, %226 : vector<8x32xf32>
    %248 = vector.extract_strided_slice %243 {offsets = [0, 0], sizes = [8, 32], strides = [1, 1]} : vector<8x96xf32> to vector<8x32xf32>
    %249 = arith.mulf %248, %245 : vector<8x32xf32>
    %250 = arith.addf %247, %249 : vector<8x32xf32>
    %251 = vector.extract_strided_slice %243 {offsets = [0, 64], sizes = [8, 32], strides = [1, 1]} : vector<8x96xf32> to vector<8x32xf32>
    %252 = math.tanh %250 : vector<8x32xf32>
    %253 = arith.mulf %251, %252 : vector<8x32xf32>
    %254 = arith.addi %11, %c7_i32 : i32
    %c12_i32_67 = arith.constant 12 : i32
    %255 = arith.cmpi slt, %254, %c12_i32_67 : i32
    %256 = arith.select %255, %253, %225 : vector<8x32xf32>
    %257 = arith.select %255, %250, %226 : vector<8x32xf32>
    %258 = arith.index_cast %c7_i32 : i32 to index
    %c0_68 = arith.constant 0 : index
    %c0_69 = arith.constant 0 : index
    %259 = vector.load %arg13[%258, %c0_68, %c0_69] : memref<8x8x32xf32, #tpu.memory_space<vmem>>, vector<1x8x32xf32>
    %260 = vector.shape_cast %259 : vector<1x8x32xf32> to vector<8x32xf32>
    %261 = vector.shape_cast %256 : vector<8x32xf32> to vector<1x8x32xf32>
    tpu.vector_store %arg13[%258, %c0_68, %c0_69], %261 {strides = array<i32>} : memref<8x8x32xf32, #tpu.memory_space<vmem>>, vector<1x8x32xf32>,
    %262 = arith.truncf %256 : vector<8x32xf32> to vector<8x32xbf16>
    %c8_i32_70 = arith.constant 8 : i32
    %c0_71 = arith.constant 0 : index
    %c0_72 = arith.constant 0 : index
    %263 = vector.load %arg10[%c0_71, %c0_72] : memref<8x32xf32, #tpu.memory_space<vmem>>, vector<8x32xf32>
    tpu.vector_store %arg10[%c0_71, %c0_72], %256 {strides = array<i32>} : memref<8x32xf32, #tpu.memory_space<vmem>>, vector<8x32xf32>,
    %c0_73 = arith.constant 0 : index
    %c0_74 = arith.constant 0 : index
    %264 = vector.load %arg11[%c0_73, %c0_74] : memref<8x32xf32, #tpu.memory_space<vmem>>, vector<8x32xf32>
    tpu.vector_store %arg11[%c0_73, %c0_74], %257 {strides = array<i32>} : memref<8x32xf32, #tpu.memory_space<vmem>>, vector<8x32xf32>,
    %c0_75 = arith.constant 0 : index
    %c0_76 = arith.constant 0 : index
    %c0_77 = arith.constant 0 : index
    %265 = vector.load %arg13[%c0_75, %c0_76, %c0_77] : memref<8x8x32xf32, #tpu.memory_space<vmem>>, vector<8x8x32xf32>
    %266 = tpu.transpose %265, [1, 0, 2] : vector<8x8x32xf32> -> vector<8x8x32xf32>
    %c0_78 = arith.constant 0 : index
    %c0_79 = arith.constant 0 : index
    %c0_80 = arith.constant 0 : index
    %267 = vector.load %arg7[%c0_78, %c0_79, %c0_80] : memref<8x8x32xf32, #tpu.memory_space<vmem>>, vector<8x8x32xf32>
    tpu.vector_store %arg7[%c0_78, %c0_79, %c0_80], %266 {strides = array<i32>} : memref<8x8x32xf32, #tpu.memory_space<vmem>>, vector<8x8x32xf32>,
    %c1_i32_81 = arith.constant 1 : i32
    %268 = arith.cmpi eq, %arg0, %c1_i32_81 : i32
    %269 = arith.extui %268 : i1 to i32
    %c0_i32_82 = arith.constant 0 : i32
    %270 = arith.cmpi ne, %269, %c0_i32_82 : i32
    scf.if %270 {
      %c0_83 = arith.constant 0 : index
      %c0_84 = arith.constant 0 : index
      %271 = vector.load %arg8[%c0_83, %c0_84] : memref<8x32xf32, #tpu.memory_space<vmem>>, vector<8x32xf32>
      tpu.vector_store %arg8[%c0_83, %c0_84], %256 {strides = array<i32>} : memref<8x32xf32, #tpu.memory_space<vmem>>, vector<8x32xf32>,
      %c0_85 = arith.constant 0 : index
      %c0_86 = arith.constant 0 : index
      %272 = vector.load %arg9[%c0_85, %c0_86] : memref<8x32xf32, #tpu.memory_space<vmem>>, vector<8x32xf32>
      tpu.vector_store %arg9[%c0_85, %c0_86], %257 {strides = array<i32>} : memref<8x32xf32, #tpu.memory_space<vmem>>, vector<8x32xf32>,
    } else {
    }
    return
  }
  func.func @transform_0(%arg0: i32) -> (i32, i32) {
    %c0_i32 = arith.constant 0 : i32
    %c0_i32_0 = arith.constant 0 : i32
    return %arg0, %c0_i32 : i32, i32
  }
  func.func @transform_1(%arg0: i32) -> (i32, i32) {
    %c0_i32 = arith.constant 0 : i32
    %c0_i32_0 = arith.constant 0 : i32
    %c0_i32_1 = arith.constant 0 : i32
    return %c0_i32, %c0_i32_0 : i32, i32
  }
  func.func @transform_2(%arg0: i32) -> (i32, i32) {
    %c0_i32 = arith.constant 0 : i32
    %c0_i32_0 = arith.constant 0 : i32
    %c0_i32_1 = arith.constant 0 : i32
    return %c0_i32, %c0_i32_0 : i32, i32
  }
  func.func @transform_3(%arg0: i32) -> (i32, i32) {
    %c0_i32 = arith.constant 0 : i32
    %c0_i32_0 = arith.constant 0 : i32
    %c0_i32_1 = arith.constant 0 : i32
    return %c0_i32, %c0_i32_0 : i32, i32
  }
  func.func @transform_4(%arg0: i32) -> (i32, i32) {
    %c0_i32 = arith.constant 0 : i32
    %c0_i32_0 = arith.constant 0 : i32
    %c0_i32_1 = arith.constant 0 : i32
    return %c0_i32, %c0_i32_0 : i32, i32
  }
  func.func @transform_5(%arg0: i32) -> (i32, i32) {
    %c0_i32 = arith.constant 0 : i32
    %c0_i32_0 = arith.constant 0 : i32
    %c0_i32_1 = arith.constant 0 : i32
    return %c0_i32, %c0_i32_0 : i32, i32
  }
  func.func @transform_6(%arg0: i32) -> (i32, i32, i32) {
    %c0_i32 = arith.constant 0 : i32
    %c0_i32_0 = arith.constant 0 : i32
    %c0_i32_1 = arith.constant 0 : i32
    return %c0_i32, %arg0, %c0_i32_0 : i32, i32, i32
  }
  func.func @transform_7(%arg0: i32) -> (i32, i32) {
    %c0_i32 = arith.constant 0 : i32
    %c0_i32_0 = arith.constant 0 : i32
    %c0_i32_1 = arith.constant 0 : i32
    return %c0_i32, %c0_i32_0 : i32, i32
  }
  func.func @transform_8(%arg0: i32) -> (i32, i32) {
    %c0_i32 = arith.constant 0 : i32
    %c0_i32_0 = arith.constant 0 : i32
    %c0_i32_1 = arith.constant 0 : i32
    return %c0_i32, %c0_i32_0 : i32, i32
  }
}

</mosaic_0001>

<bundles_post_ra>
// kernel: tpu_custom_call.1
= control target key start
LH: loop header
LB: loop body
LE: loop exit
PB: predicated region body
PF: predicated region fallthrough
CT: control target
= control target key end

     0   :  { %14 = vsyncpa [#allocation7], 0  ;;  %s2305_s0 = inlined_call_operand.vmem [shape: bf16[128,32], index: 0, kind: input, shape index: {}]   ;;  %s2306_s1 = inlined_call_operand.vmem [shape: bf16[32,128], index: 1, kind: input, shape index: {}]   ;;  %s2307_s2 = inlined_call_operand.vmem [shape: bf16[32,128], index: 2, kind: input, shape index: {}]   ;;  %s2308_s3 = inlined_call_operand.vmem [shape: f32[1,128], index: 3, kind: input, shape index: {}]   ;;  %s2309_s4 = inlined_call_operand.vmem [shape: f32[8,32], index: 4, kind: input, shape index: {}]   ;;  %s2310_s5 = inlined_call_operand.vmem [shape: f32[8,32], index: 5, kind: input, shape index: {}]   ;;  %s2311_s6 = inlined_call_operand.hbm [shape: f32[8,16,32], index: 6, kind: output, shape index: {0}]   ;;  %s2312_s7 = inlined_call_operand.hbm [shape: f32[8,32], index: 7, kind: output, shape index: {1}]   ;;  %s2313_s8 = inlined_call_operand.hbm [shape: f32[8,32], index: 8, kind: output, shape index: {2}]  }
   0x1   :  { %16 = vsyncpa [#allocation7 + $0x1], 0 }
   0x2   :  { %17 = vsyncpa [#allocation9], 0  ;;  %s1908_s27 = smov 0   ;;  %s1910_s28 = smov 0  }
   0x3   :  { %s1912_s29 = smov 0   ;;  %s1914_s30 = smov 0  }
   0x4 LB: > { %s1929_s9 = sadd.s32 4294967295, %s1848_s30   ;;  %s1448_s10 = sadd.s32 4294967294, %s1848_s30   ;;  %s1848_s30 = sphi %s1914_s30, %s2321_s30   ;;  %s1844_s29 = sphi %s1912_s29, %s2320_s29   ;;  %s1840_s28 = sphi %s1910_s28, %s2319_s28   ;;  %s1836_s27 = sphi %s1908_s27, %s2318_s27  }
   0x5   : > { %s1933_s11 = sadd.s32 1, %s1848_s30   ;;  %s161_s12 = sadd.s32 1, %s1844_s29 }
   0x6   : > { %s158_s13 = ssub.s32 %s1848_s30, %s1933_s11  ;;  %p171_p0 = scmp.ne.s32.totalorder %s1844_s29, %s1840_s28 }
   0x7   : > { %p159_p1 = scmp.eq.s32.totalorder %s158_s13, 0  ;;  %p172_p2 = scmp.eq.s32.totalorder %s1929_s9, 1 }
   0x8   : > { %p177_p3 = scmp.ne.s32.totalorder %s1840_s28, %s1836_s27  ;;  %p178_p4 = scmp.eq.s32.totalorder %s1448_s10, 1 }
   0x9   : > { %s1944_s14 = scalar_select %p159_p1, %s1844_s29, %s161_s12  }
   0xa   : > { %p1948_p5 = por %p172_p2, %p171_p0  ;;  %p1952_p6 = por %p178_p4, %p177_p3 }
   0xb   : > { %p1451_p7 = scmp.ge.s32.totalorder %s1848_s30, 1  ;;  %p262_p8 = scmp.lt.s32.totalorder %s1848_s30, 3 }
   0xd   : > { %p263_p9 = pnand %p1451_p7, %p262_p8 }
   0xe   : > { %s289_s17 = sand.u32 (!%p263_p9), 1, %s1840_s28   ;;  %s1960_s18 = sshll.u32 (!%p263_p9), %s1929_s9, 3 }
   0xf   : > { %266 = sbr.rel (%p263_p9) target bundleno = 5651 (0x1613), region = 44  ;;  %s1452_s19 = sshll.u32 (!%p263_p9), %s289_s17, 6 }
  0x10   : > { %p297_p10 = scmp.lt.s32.totalorder (!%p263_p9), %s1960_s18, 15  ;;  %s1971_s25 = scalar_lea.vmem (!%p263_p9), [#allocation6], %s1452_s19 }
  0x11   : > { %p1455_p11 = scmp.ne.s32.totalorder (!%p263_p9), %s1929_s9, 0 }
  0x14   : > { %s298_s20 = scalar_select %p297_p10, %s1960_s18, 15 }
  0x15   : > { %306 = sbr.rel (%p1455_p11) target bundleno = 29 (0x1d), region = 48 }
  0x16   : > { %s1454_s21 = sshll.u32 %s298_s20, 2 }
  0x17   : > { %s1969_s24 = scalar_lea.vmem %s2305_s0, %s1454_s21 }
  0x1a   : > { %v307_v0 = vld [vmem:[%s2309_s4] sm:$0xff]  ;;  %vm308_vm0 = vcmask 261120  }
  0x1b   : > { %v310_v1 = vld [vmem:[%s2310_s5] sm:$0xff]  ;;  %309 = vst.msk [vmem:[#allocation2] sm:$0xff] %vm308_vm0, %v307_v0 }
  0x1c   : > { %311 = vst.msk [vmem:[#allocation3] sm:$0xff] %vm308_vm0, %v310_v1 }
  0x1d PF: > { %v1664_v2 = vld [vmem:[%s2306_s1 + $0x8] sm:$0xff]   ;;  %v1850_v3 = vmov 0.0   ;;  %v1666_v5 = vld [vmem:[%s2306_s1] sm:$0xff]   ;;  %vm1851_vm1 = vmmov 0   ;;  %vm363_vm2 = vcmask 261120   ;;  %s1852_s21 = smov 32  }
  0x1e   : > { %1537 = vmatprep.subr.bf16.mxu1 %v1850_v3  ;;  %v1987_v4 = vld [vmem:[%s2307_s2 + $0x8] sm:$0xff]   ;;  %1525 = vmatprep.subr.bf16.mxu0 %v1664_v2  ;;  %v1998_v6 = vld [vmem:[%s2307_s2] sm:$0xff]   ;;  %s1853_s19 = smov 64   ;;  %p542_p12 = scmp.lt.s32.totalorder %s1960_s18, 12  ;;  %v1670_v60 = vld [vmem:[%s1969_s24 + $0x10] sm:$0xff]  }
  0x1f   : > { %1541 = vmatprep.mubr.msk.bf16.mxu1 %vm1851_vm1, %v1850_v3  ;;  %1538 = vmatpush3.bf16.msra.mxu1 %v1987_v4  ;;  %v1668_v7 = vld [vmem:[%s1969_s24] sm:$0xff]   ;;  %v1669_v10 = vld [vmem:[%s1969_s24 + $0x8] sm:$0xff]   ;;  %v1671_v61 = vld [vmem:[%s1969_s24 + $0x18] sm:$0xff]   ;;  %s631_s23 = sadd.s32 1, %s1960_s18  ;;  %s718_s24 = sadd.s32 2, %s1960_s18 }
  0x20   : > { %1526 = vmatpush3.bf16.msra.mxu0 %v1664_v2  ;;  %1539 = vmatprep.subr.bf16.mxu1 %v1850_v3  ;;  %v2024_v13 = vld [vmem:[%s2308_s3] ss:$0 sm:$0xff]  ;;  %s543_s22 = scalar_select %p542_p12, 1, 0 }
  0x21   : > { %1527 = vmatprep.subr.bf16.mxu0 %v1666_v5  ;;  %1529 = vmatprep.mubr.msk.bf16.mxu0 %vm363_vm2, %v1668_v7  ;;  %p632_p13 = scmp.lt.s32.totalorder %s631_s23, 12  ;;  %p719_p0 = scmp.lt.s32.totalorder %s718_s24, 12 }
  0x22   : > { %v454_v8 = vld [vmem:[#allocation2] sm:$0xff]  ;;  %v544_v33 = vstv %s543_s22  ;;  %s805_s12 = sadd.s32 3, %s1960_s18  ;;  %s892_s20 = sadd.s32 4, %s1960_s18 }
  0x23   : > { %v455_v9 = vpack.c.bf16 %v454_v8, %v454_v8  ;;  %1540 = vmatpush3.bf16.msra.mxu1 %v1998_v6  ;;  %v456_v21 = vld [vmem:[#allocation3] sm:$0xff]  ;;  %vm2033_vm3 = vcmp.eq.s32.totalorder %v544_v33, 1  ;;  %s633_s26 = scalar_select %p632_p13, 1, 0 }
  0x24   : > { %1528 = vmatpush3.bf16.msra.mxu0 %v1666_v5  ;;  %1545 = vmatprep.subr.bf16.mxu1 %v1850_v3  ;;  %s720_s10 = scalar_select %p719_p0, 1, 0 }
  0x25   : > { %1553 = vmatprep.subr.bf16.mxu0 %v1850_v3  ;;  %v634_v63 = vstv %s633_s26  ;;  %p806_p1 = scmp.lt.s32.totalorder %s805_s12, 12  ;;  %p893_p3 = scmp.lt.s32.totalorder %s892_s20, 12 }
  0x26   : > { %1542 = vmatmul.mubr.msk.bf16.vlgmr.msra.gmra.mxu1 %vm363_vm2, %v455_v9  ;;  %vm635_vm4 = vcmp.eq.s32.totalorder %v634_v63, 1  ;;  %s979_s23 = sadd.s32 5, %s1960_s18  ;;  %s1066_s24 = sadd.s32 6, %s1960_s18 }
  0x27   : > { %1530 = vmatmul.mubr.msk.bf16.vlgmr.msra.gmra.mxu0 %vm363_vm2, %v1669_v10  ;;  %1546 = vmatpush3.bf16.msra.mxu1 %v1987_v4  ;;  %s807_s13 = scalar_select %p806_p1, 1, 0 }
  0x28   : > { %1549 = vmatprep.mubr.msk.bf16.mxu1 %vm1851_vm1, %v1850_v3  ;;  %1547 = vmatprep.subr.bf16.mxu1 %v1850_v3  ;;  %s894_s22 = scalar_select %p893_p3, 1, 0 }
  0x29   : > { %1554 = vmatpush3.bf16.msra.mxu0 %v1987_v4  ;;  %1533 = vmatprep.mubr.msk.bf16.mxu0 %vm363_vm2, %v1670_v60  ;;  %p980_p4 = scmp.lt.s32.totalorder %s979_s23, 12  ;;  %p1067_p7 = scmp.lt.s32.totalorder %s1066_s24, 12 }
  0x2a   : > { %1555 = vmatprep.subr.bf16.mxu0 %v1850_v3  ;;  %s1153_s12 = sadd.s32 7, %s1960_s18  ;;  %s1854_s20 = smov 96  }
  0x2b   : > { %1548 = vmatpush3.bf16.msra.mxu1 %v1998_v6  ;;  %s981_s26 = scalar_select %p980_p4, 1, 0 }
  0x2c   : > { %1561 = vmatprep.subr.bf16.mxu1 %v1850_v3  ;;  %p1154_p8 = scmp.lt.s32.totalorder %s1153_s12, 12  ;;  %p1486_p9 = scmp.ne.s32.totalorder %s1929_s9, 1 }
  0x2d   : > { %1556 = vmatpush3.bf16.msra.mxu0 %v1998_v6 }
  0x2e   : > { %1569 = vmatprep.subr.bf16.mxu0 %v1850_v3 }
  0x2f   : > { %1534 = vmatmul.mubr.msk.bf16.gmra.mxu0 %vm363_vm2, %v1671_v61 }
  0x30   : > { %1557 = vmatprep.mubr.msk.bf16.mxu0 %vm1851_vm1, %v1850_v3 }
  0xe6   : > { %v507_v11 = vpop.f32.mrf.mxu1 }
  0xe7   : > { %v2019_v12 = vpop.f32.mrf.mxu0 }
  0xe8   : > { %v1543_v14 = vpop.f32.mrf.mxu1 }
  0xe9   : > { %v410_v15 = vpop.f32.mrf.mxu0  ;;  %v419_v14 = vadd.f32 %v2019_v12, %v2024_v13 }
  0xea   : > { %v411_v16 = vadd.f32 %v2024_v13, %v410_v15  ;;  %v510_v17 = vpop.f32.mrf.mxu1 }
  0xeb   : > { %v2051_v41 = vpop.f32.mrf.mxu0 }
  0xec   : > { %v513_v18 = vadd.f32 %v507_v11, %v411_v16  ;;  %v1544_v19 = vpop.f32.mrf.mxu1  ;;  %v422_v37 = vadd.f32 %v2051_v41, %v2024_v13 }
  0xed   : > { %v413_v42 = vpop.f32.mrf.mxu0 }
  0xee   : > { %1672 = vtanh.f32 %v513_v18  ;;  %v1471_v22 = vmul.f32 -1.442695, %v513_v18  ;;  %v414_v43 = vadd.f32 %v2024_v13, %v413_v42 }
  0xf0   : > { %1674 = vpow2.f32 %v1471_v22 }
  0xfb   : > { %v1673_v20 = vpop.eup %1672 }
  0xfc   : > { %527 = vrot.lane.b32.xlu0 %v1673_v20, %s1852_s21 }
  0xfd   : > { %v1675_v23 = vpop.eup %1674 }
  0xfe   : > { %v517_v24 = vadd.f32 1.0, %v1675_v23 }
 0x100   : > { %522 = vrot.lane.b32.xlu0 %v456_v21, %s1852_s21  ;;  %1676 = vrcp.f32 %v517_v24 }
 0x104   : > { %547 = vrot.lane.b32.xlu0 %v454_v8, %s1853_s19  ;;  %v2080_v8 = vpop.f32.mrf.mxu0 }
 0x106   : > { %v2082_v9 = vpop.f32.mrf.mxu0 }
 0x108   : > { %v2084_v10 = vpop.f32.mrf.mxu0 }
 0x10a   : > { %v2086_v11 = vpop.f32.mrf.mxu0 }
 0x10d   : > { %v1677_v25 = vpop.eup %1676 }
 0x16e   : > { %v528_v26 = vpop.permute.xlu0 %527 }
 0x16f   : > { %v530_v27 = vmul.f32 %v1677_v25, %v528_v26 }
 0x171   : > { %532 = vrot.lane.b32.xlu1 %v530_v27, %s1852_s21 }
 0x172   : > { %v523_v28 = vpop.permute.xlu0 %522 }
 0x173   : > { %v525_v29 = vmul.f32 %v1677_v25, %v523_v28 }
 0x176   : > { %v548_v35 = vpop.permute.xlu0 %547 }
 0x1e3   : > { %v533_v30 = vpop.permute.xlu1 %532 }
 0x1e4   : > { %v535_v31 = vadd.f32 %v533_v30, %v525_v29 }
 0x1e6   : > { %1678 = vtanh.f32 %v535_v31  ;;  %v551_v56 = vsel %vm2033_vm3, %v535_v31, %v523_v28  ;;  %v721_v31 = vstv %s720_s10  ;;  %s1068_s10 = scalar_select %p1067_p7, 1, 0 }
 0x1e7   : > { %vm722_vm5 = vcmp.eq.s32.totalorder %v721_v31, 1 }
 0x1f3   : > { %v1679_v32 = vpop.eup %1678 }
 0x1f4   : > { %538 = vrot.lane.b32.xlu1 %v1679_v32, %s1852_s21 }
 0x266   : > { %v539_v34 = vpop.permute.xlu1 %538 }
 0x267   : > { %v541_v36 = vmul.f32 %v1677_v25, %v539_v34 }
 0x269   : > { %v2039_v38 = vsel %vm2033_vm3, %v541_v36, %v548_v35 }
 0x26a   : > { %v557_v39 = vpack.c.bf16 %v2039_v38, %v2039_v38 }
 0x26c   : > { %561 = vrot.lane.b32.xlu1 %v557_v39, %s1853_s19 }
 0x2de   : > { %v562_v40 = vpop.permute.xlu1 %561 }
 0x2df   : > { %1550 = vmatmul.mubr.msk.bf16.vlgmr.msra.gmra.mxu1 %vm363_vm2, %v562_v40 }
 0x2e0   : > { %1562 = vmatpush3.bf16.msra.mxu1 %v1987_v4  ;;  %1565 = vmatprep.mubr.msk.bf16.mxu1 %vm1851_vm1, %v1850_v3 }
 0x2e1   : > { %1563 = vmatprep.subr.bf16.mxu1 %v1850_v3 }
 0x2e4   : > { %1564 = vmatpush3.bf16.msra.mxu1 %v1998_v6 }
 0x2e5   : > { %1577 = vmatprep.subr.bf16.mxu1 %v1850_v3 }
 0x39f   : > { %v600_v44 = vpop.f32.mrf.mxu1 }
 0x3a0   : > { %v606_v45 = vadd.f32 %v600_v44, %v414_v43 }
 0x3a1   : > { %v1551_v46 = vpop.f32.mrf.mxu1 }
 0x3a2   : > { %1680 = vtanh.f32 %v606_v45  ;;  %v1473_v50 = vmul.f32 -1.442695, %v606_v45 }
 0x3a3   : > { %v603_v47 = vpop.f32.mrf.mxu1 }
 0x3a4   : > { %1682 = vpow2.f32 %v1473_v50 }
 0x3a5   : > { %v1552_v48 = vpop.f32.mrf.mxu1 }
 0x3af   : > { %v1681_v49 = vpop.eup %1680 }
 0x3b0   : > { %616 = vrot.lane.b32.xlu0 %v1681_v49, %s1852_s21 }
 0x3b1   : > { %v1683_v51 = vpop.eup %1682 }
 0x3b2   : > { %v610_v52 = vadd.f32 1.0, %v1683_v51 }
 0x3b4   : > { %1684 = vrcp.f32 %v610_v52 }
 0x3c1   : > { %v1685_v53 = vpop.eup %1684 }
 0x3c2   : > { %v614_v57 = vmul.f32 %v1685_v53, %v551_v56 }
 0x422   : > { %v617_v54 = vpop.permute.xlu0 %616 }
 0x423   : > { %v619_v55 = vmul.f32 %v1685_v53, %v617_v54 }
 0x425   : > { %621 = vrot.lane.b32.xlu1 %v619_v55, %s1852_s21 }
 0x497   : > { %v622_v58 = vpop.permute.xlu1 %621 }
 0x498   : > { %v624_v59 = vadd.f32 %v622_v58, %v614_v57 }
 0x49a   : > { %1686 = vtanh.f32 %v624_v59  ;;  %v637_v12 = vsel %vm635_vm4, %v624_v59, %v551_v56  ;;  %v808_v56 = vstv %s807_s13  ;;  %s1155_s13 = scalar_select %p1154_p8, 1, 0 }
 0x49b   : > { %vm809_vm6 = vcmp.eq.s32.totalorder %v808_v56, 1 }
 0x4a7   : > { %v1687_v62 = vpop.eup %1686 }
 0x4a8   : > { %627 = vrot.lane.b32.xlu0 %v1687_v62, %s1852_s21  ;;  %v427_v62 = vadd.f32 %v2024_v13, %v2082_v9 }
 0x51a   : > { %v628_v0 = vpop.permute.xlu0 %627 }
 0x51b   : > { %v630_v1 = vmul.f32 %v1685_v53, %v628_v0 }
 0x51d   : > { %v2068_v2 = vsel %vm635_vm4, %v630_v1, %v2039_v38 }
 0x51e   : > { %v644_v5 = vpack.c.bf16 %v2068_v2, %v2068_v2 }
 0x520   : > { %648 = vrot.lane.b32.xlu1 %v644_v5, %s1853_s19 }
 0x592   : > { %v649_v7 = vpop.permute.xlu1 %648 }
 0x593   : > { %1558 = vmatmul.mubr.msk.bf16.vlgmr.msra.gmra.mxu0 %vm363_vm2, %v649_v7 }
 0x594   : > { %1570 = vmatpush3.bf16.msra.mxu0 %v1987_v4  ;;  %1573 = vmatprep.mubr.msk.bf16.mxu0 %vm1851_vm1, %v1850_v3 }
 0x595   : > { %1571 = vmatprep.subr.bf16.mxu0 %v1850_v3 }
 0x598   : > { %1572 = vmatpush3.bf16.msra.mxu0 %v1998_v6 }
 0x599   : > { %1585 = vmatprep.subr.bf16.mxu0 %v1850_v3 }
 0x653   : > { %v687_v15 = vpop.f32.mrf.mxu0 }
 0x654   : > { %v693_v16 = vadd.f32 %v687_v15, %v419_v14 }
 0x655   : > { %v1559_v17 = vpop.f32.mrf.mxu0 }
 0x656   : > { %1688 = vtanh.f32 %v693_v16  ;;  %v1475_v21 = vmul.f32 -1.442695, %v693_v16 }
 0x657   : > { %v690_v18 = vpop.f32.mrf.mxu0 }
 0x658   : > { %1690 = vpow2.f32 %v1475_v21 }
 0x659   : > { %v1560_v19 = vpop.f32.mrf.mxu0 }
 0x663   : > { %v1689_v20 = vpop.eup %1688 }
 0x664   : > { %703 = vrot.lane.b32.xlu0 %v1689_v20, %s1852_s21 }
 0x665   : > { %v1691_v22 = vpop.eup %1690 }
 0x666   : > { %v697_v23 = vadd.f32 1.0, %v1691_v22 }
 0x668   : > { %1692 = vrcp.f32 %v697_v23 }
 0x675   : > { %v1693_v24 = vpop.eup %1692 }
 0x676   : > { %v701_v27 = vmul.f32 %v1693_v24, %v637_v12 }
 0x6d6   : > { %v704_v25 = vpop.permute.xlu0 %703 }
 0x6d7   : > { %v706_v26 = vmul.f32 %v1693_v24, %v704_v25  ;;  %v895_v25 = vstv %s894_s22 }
 0x6d8   : > { %vm896_vm7 = vcmp.eq.s32.totalorder %v895_v25, 1 }
 0x6d9   : > { %708 = vrot.lane.b32.xlu1 %v706_v26, %s1852_s21 }
 0x74b   : > { %v709_v28 = vpop.permute.xlu1 %708 }
 0x74c   : > { %v711_v29 = vadd.f32 %v709_v28, %v701_v27 }
 0x74e   : > { %1694 = vtanh.f32 %v711_v29  ;;  %v724_v41 = vsel %vm722_vm5, %v711_v29, %v637_v12 }
 0x75b   : > { %v1695_v30 = vpop.eup %1694 }
 0x75c   : > { %714 = vrot.lane.b32.xlu0 %v1695_v30, %s1852_s21  ;;  %v430_v30 = vadd.f32 %v2024_v13, %v2086_v11 }
 0x7ce   : > { %v715_v32 = vpop.permute.xlu0 %714 }
 0x7cf   : > { %v717_v33 = vmul.f32 %v1693_v24, %v715_v32 }
 0x7d1   : > { %v2097_v34 = vsel %vm722_vm5, %v717_v33, %v2068_v2 }
 0x7d2   : > { %v731_v35 = vpack.c.bf16 %v2097_v34, %v2097_v34 }
 0x7d4   : > { %735 = vrot.lane.b32.xlu1 %v731_v35, %s1853_s19 }
 0x846   : > { %v736_v36 = vpop.permute.xlu1 %735 }
 0x847   : > { %1566 = vmatmul.mubr.msk.bf16.vlgmr.msra.gmra.mxu1 %vm363_vm2, %v736_v36 }
 0x848   : > { %1578 = vmatpush3.bf16.msra.mxu1 %v1987_v4  ;;  %1581 = vmatprep.mubr.msk.bf16.mxu1 %vm1851_vm1, %v1850_v3 }
 0x849   : > { %1579 = vmatprep.subr.bf16.mxu1 %v1850_v3 }
 0x84c   : > { %1580 = vmatpush3.bf16.msra.mxu1 %v1998_v6 }
 0x84d   : > { %1593 = vmatprep.subr.bf16.mxu1 %v1850_v3 }
 0x907   : > { %v774_v39 = vpop.f32.mrf.mxu1 }
 0x908   : > { %v780_v40 = vadd.f32 %v774_v39, %v422_v37 }
 0x909   : > { %v1567_v42 = vpop.f32.mrf.mxu1 }
 0x90a   : > { %1696 = vtanh.f32 %v780_v40  ;;  %v1477_v46 = vmul.f32 -1.442695, %v780_v40 }
 0x90b   : > { %v777_v43 = vpop.f32.mrf.mxu1 }
 0x90c   : > { %1698 = vpow2.f32 %v1477_v46 }
 0x90d   : > { %v1568_v44 = vpop.f32.mrf.mxu1 }
 0x917   : > { %v1697_v45 = vpop.eup %1696 }
 0x918   : > { %790 = vrot.lane.b32.xlu0 %v1697_v45, %s1852_s21 }
 0x919   : > { %v1699_v47 = vpop.eup %1698 }
 0x91a   : > { %v784_v48 = vadd.f32 1.0, %v1699_v47  ;;  %v982_v47 = vstv %s981_s26 }
 0x91b   : > { %vm983_vm8 = vcmp.eq.s32.totalorder %v982_v47, 1 }
 0x91c   : > { %1700 = vrcp.f32 %v784_v48 }
 0x929   : > { %v1701_v49 = vpop.eup %1700 }
 0x92a   : > { %v788_v52 = vmul.f32 %v1701_v49, %v724_v41 }
 0x98a   : > { %v791_v50 = vpop.permute.xlu0 %790 }
 0x98b   : > { %v793_v51 = vmul.f32 %v1701_v49, %v791_v50 }
 0x98d   : > { %795 = vrot.lane.b32.xlu1 %v793_v51, %s1852_s21 }
 0x9ff   : > { %v796_v53 = vpop.permute.xlu1 %795 }
 0xa00   : > { %v798_v54 = vadd.f32 %v796_v53, %v788_v52  ;;  %v435_v52 = vadd.f32 %v2080_v8, %v2024_v13 }
 0xa02   : > { %1702 = vtanh.f32 %v798_v54  ;;  %v811_v9 = vsel %vm809_vm6, %v798_v54, %v724_v41 }
 0xa0f   : > { %v1703_v55 = vpop.eup %1702 }
 0xa10   : > { %801 = vrot.lane.b32.xlu0 %v1703_v55, %s1852_s21 }
 0xa82   : > { %v802_v57 = vpop.permute.xlu0 %801 }
 0xa83   : > { %v804_v58 = vmul.f32 %v1701_v49, %v802_v57 }
 0xa85   : > { %v2118_v59 = vsel %vm809_vm6, %v804_v58, %v2097_v34 }
 0xa86   : > { %v818_v60 = vpack.c.bf16 %v2118_v59, %v2118_v59 }
 0xa88   : > { %822 = vrot.lane.b32.xlu1 %v818_v60, %s1853_s19 }
 0xafa   : > { %v823_v61 = vpop.permute.xlu1 %822 }
 0xafb   : > { %1574 = vmatmul.mubr.msk.bf16.vlgmr.msra.gmra.mxu0 %vm363_vm2, %v823_v61 }
 0xafc   : > { %1586 = vmatpush3.bf16.msra.mxu0 %v1987_v4  ;;  %1589 = vmatprep.mubr.msk.bf16.mxu0 %vm1851_vm1, %v1850_v3 }
 0xafd   : > { %1587 = vmatprep.subr.bf16.mxu0 %v1850_v3 }
 0xb00   : > { %1588 = vmatpush3.bf16.msra.mxu0 %v1998_v6 }
 0xbbb   : > { %v861_v63 = vpop.f32.mrf.mxu0 }
 0xbbc   : > { %v867_v0 = vadd.f32 %v861_v63, %v427_v62 }
 0xbbd   : > { %v1575_v1 = vpop.f32.mrf.mxu0 }
 0xbbe   : > { %1704 = vtanh.f32 %v867_v0  ;;  %v1479_v15 = vmul.f32 -1.442695, %v867_v0 }
 0xbbf   : > { %v864_v5 = vpop.f32.mrf.mxu0 }
 0xbc0   : > { %1706 = vpow2.f32 %v1479_v15 }
 0xbc1   : > { %v1576_v7 = vpop.f32.mrf.mxu0 }
 0xbcb   : > { %v1705_v14 = vpop.eup %1704 }
 0xbcc   : > { %877 = vrot.lane.b32.xlu0 %v1705_v14, %s1852_s21 }
 0xbcd   : > { %v1707_v16 = vpop.eup %1706 }
 0xbce   : > { %v871_v17 = vadd.f32 1.0, %v1707_v16  ;;  %v1069_v16 = vstv %s1068_s10 }
 0xbcf   : > { %vm1070_vm9 = vcmp.eq.s32.totalorder %v1069_v16, 1 }
 0xbd0   : > { %1708 = vrcp.f32 %v871_v17 }
 0xbdd   : > { %v1709_v18 = vpop.eup %1708 }
 0xbde   : > { %v875_v21 = vmul.f32 %v1709_v18, %v811_v9 }
 0xc3e   : > { %v878_v19 = vpop.permute.xlu0 %877 }
 0xc3f   : > { %v880_v20 = vmul.f32 %v1709_v18, %v878_v19 }
 0xc41   : > { %882 = vrot.lane.b32.xlu1 %v880_v20, %s1852_s21 }
 0xcb3   : > { %v883_v22 = vpop.permute.xlu1 %882 }
 0xcb4   : > { %v885_v23 = vadd.f32 %v883_v22, %v875_v21  ;;  %v438_v21 = vadd.f32 %v2084_v10, %v2024_v13  ;;  %v1156_v13 = vstv %s1155_s13 }
 0xcb5   : > { %vm1157_vm10 = vcmp.eq.s32.totalorder %v1156_v13, 1 }
 0xcb6   : > { %1710 = vtanh.f32 %v885_v23  ;;  %v898_v11 = vsel %vm896_vm7, %v885_v23, %v811_v9 }
 0xcc3   : > { %v1711_v24 = vpop.eup %1710 }
 0xcc4   : > { %888 = vrot.lane.b32.xlu0 %v1711_v24, %s1852_s21 }
 0xd36   : > { %v889_v26 = vpop.permute.xlu0 %888 }
 0xd37   : > { %v891_v12 = vmul.f32 %v1709_v18, %v889_v26 }
 0xd39   : > { %v2138_v27 = vsel %vm896_vm7, %v891_v12, %v2118_v59 }
 0xd3a   : > { %v905_v28 = vpack.c.bf16 %v2138_v27, %v2138_v27 }
 0xd3c   : > { %909 = vrot.lane.b32.xlu1 %v905_v28, %s1853_s19 }
 0xdae   : > { %v910_v29 = vpop.permute.xlu1 %909 }
 0xdaf   : > { %1582 = vmatmul.mubr.msk.bf16.vlgmr.msra.gmra.mxu1 %vm363_vm2, %v910_v29 }
 0xdb0   : > { %1594 = vmatpush3.bf16.msra.mxu1 %v1987_v4  ;;  %1597 = vmatprep.mubr.msk.bf16.mxu1 %vm1851_vm1, %v1850_v3 }
 0xdb1   : > { %1595 = vmatprep.subr.bf16.mxu1 %v1850_v3 }
 0xdb4   : > { %1596 = vmatpush3.bf16.msra.mxu1 %v1998_v6 }
 0xe6f   : > { %v948_v31 = vpop.f32.mrf.mxu1 }
 0xe70   : > { %v954_v32 = vadd.f32 %v948_v31, %v430_v30 }
 0xe71   : > { %v1583_v33 = vpop.f32.mrf.mxu1 }
 0xe72   : > { %1712 = vtanh.f32 %v954_v32  ;;  %v1481_v4 = vmul.f32 -1.442695, %v954_v32 }
 0xe73   : > { %v951_v35 = vpop.f32.mrf.mxu1 }
 0xe74   : > { %1714 = vpow2.f32 %v1481_v4 }
 0xe75   : > { %v1584_v36 = vpop.f32.mrf.mxu1 }
 0xe7f   : > { %v1713_v37 = vpop.eup %1712 }
 0xe80   : > { %964 = vrot.lane.b32.xlu0 %v1713_v37, %s1852_s21 }
 0xe81   : > { %v1715_v39 = vpop.eup %1714 }
 0xe82   : > { %v958_v40 = vadd.f32 1.0, %v1715_v39 }
 0xe84   : > { %1716 = vrcp.f32 %v958_v40 }
 0xe91   : > { %v1717_v3 = vpop.eup %1716 }
 0xe92   : > { %v962_v43 = vmul.f32 %v1717_v3, %v898_v11 }
 0xef2   : > { %v965_v6 = vpop.permute.xlu0 %964 }
 0xef3   : > { %v967_v42 = vmul.f32 %v1717_v3, %v965_v6 }
 0xef5   : > { %969 = vrot.lane.b32.xlu1 %v967_v42, %s1852_s21 }
 0xf67   : > { %v970_v44 = vpop.permute.xlu1 %969 }
 0xf68   : > { %v972_v45 = vadd.f32 %v970_v44, %v962_v43  ;;  %v1855_v44 = vmov 1983009808  }
 0xf6a   : > { %1718 = vtanh.f32 %v972_v45  ;;  %v985_v8 = vsel %vm983_vm8, %v972_v45, %v898_v11  ;;  %v1183_v45 = vunpack.c.l.s4 %v1855_v44 }
 0xf77   : > { %v1719_v46 = vpop.eup %1718 }
 0xf78   : > { %975 = vrot.lane.b32.xlu0 %v1719_v46, %s1852_s21  ;;  %v1185_v46 = vlaneseq }
 0xfea   : > { %v976_v48 = vpop.permute.xlu0 %975 }
 0xfeb   : > { %v978_v49 = vmul.f32 %v1717_v3, %v976_v48  ;;  %v1184_v48 = vunpack.c.0.s8 %v1183_v45 }
 0xfed   : > { %v2158_v50 = vsel %vm983_vm8, %v978_v49, %v2138_v27  ;;  %v1186_v49 = vshrl.u32 %v1185_v46, 7 }
 0xfee   : > { %v992_v51 = vpack.c.bf16 %v2158_v50, %v2158_v50 }
 0xff0   : > { %996 = vrot.lane.b32.xlu1 %v992_v51, %s1853_s19 }
0x1062   : > { %v997_v41 = vpop.permute.xlu1 %996 }
0x1063   : > { %1590 = vmatmul.mubr.msk.bf16.vlgmr.msra.gmra.mxu0 %vm363_vm2, %v997_v41 }
0x1123   : > { %v1035_v53 = vpop.f32.mrf.mxu0 }
0x1124   : > { %v1041_v54 = vadd.f32 %v1035_v53, %v435_v52  ;;  %v1856_v52 = vmov 1934713408  }
0x1125   : > { %v1591_v55 = vpop.f32.mrf.mxu0  ;;  %v1247_v53 = vunpack.c.l.s4 %v1856_v52 }
0x1126   : > { %1720 = vtanh.f32 %v1041_v54  ;;  %v1483_v60 = vmul.f32 -1.442695, %v1041_v54 }
0x1127   : > { %v1038_v56 = vpop.f32.mrf.mxu0 }
0x1128   : > { %1722 = vpow2.f32 %v1483_v60  ;;  %v1187_v56 = vsub.s32 %v1184_v48, %v1186_v49 }
0x1129   : > { %v1592_v57 = vpop.f32.mrf.mxu0 }
0x1133   : > { %v1721_v58 = vpop.eup %1720 }
0x1134   : > { %1051 = vrot.lane.b32.xlu0 %v1721_v58, %s1852_s21 }
0x1135   : > { %v1723_v61 = vpop.eup %1722 }
0x1136   : > { %v1045_v62 = vadd.f32 1.0, %v1723_v61 }
0x1138   : > { %1724 = vrcp.f32 %v1045_v62 }
0x1145   : > { %v1725_v63 = vpop.eup %1724 }
0x1146   : > { %v1049_v5 = vmul.f32 %v1725_v63, %v985_v8 }
0x11a6   : > { %v1052_v0 = vpop.permute.xlu0 %1051 }
0x11a7   : > { %v1054_v1 = vmul.f32 %v1725_v63, %v1052_v0 }
0x11a9   : > { %1056 = vrot.lane.b32.xlu1 %v1054_v1, %s1852_s21 }
0x121b   : > { %v1057_v7 = vpop.permute.xlu1 %1056 }
0x121c   : > { %v1059_v14 = vadd.f32 %v1057_v7, %v1049_v5 }
0x121e   : > { %1726 = vtanh.f32 %v1059_v14  ;;  %v1072_v10 = vsel %vm1070_vm9, %v1059_v14, %v985_v8 }
0x122b   : > { %v1727_v15 = vpop.eup %1726 }
0x122c   : > { %1062 = vrot.lane.b32.xlu0 %v1727_v15, %s1852_s21 }
0x129e   : > { %v1063_v17 = vpop.permute.xlu0 %1062 }
0x129f   : > { %v1065_v18 = vmul.f32 %v1725_v63, %v1063_v17  ;;  %v1248_v63 = vunpack.c.0.s8 %v1247_v53 }
0x12a1   : > { %v1071_v19 = vsel %vm1070_vm9, %v1065_v18, %v2158_v50 }
0x12a2   : > { %v1079_v20 = vpack.c.bf16 %v1071_v19, %v1071_v19 }
0x12a4   : > { %1083 = vrot.lane.b32.xlu1 %v1079_v20, %s1853_s19 }
0x1316   : > { %v1084_v9 = vpop.permute.xlu1 %1083 }
0x1317   : > { %1598 = vmatmul.mubr.msk.bf16.vlgmr.msra.gmra.mxu1 %vm363_vm2, %v1084_v9 }
0x13d7   : > { %v1122_v22 = vpop.f32.mrf.mxu1 }
0x13d8   : > { %v1128_v23 = vadd.f32 %v1122_v22, %v438_v21 }
0x13d9   : > { %v1599_v24 = vpop.f32.mrf.mxu1 }
0x13da   : > { %1728 = vtanh.f32 %v1128_v23  ;;  %v1485_v28 = vmul.f32 -1.442695, %v1128_v23 }
0x13db   : > { %v1125_v25 = vpop.f32.mrf.mxu1 }
0x13dc   : > { %1730 = vpow2.f32 %v1485_v28 }
0x13dd   : > { %v1600_v26 = vpop.f32.mrf.mxu1 }
0x13e7   : > { %v1729_v12 = vpop.eup %1728 }
0x13e8   : > { %1138 = vrot.lane.b32.xlu0 %v1729_v12, %s1852_s21 }
0x13e9   : > { %v1731_v29 = vpop.eup %1730 }
0x13ea   : > { %v1132_v30 = vadd.f32 1.0, %v1731_v29 }
0x13ec   : > { %1732 = vrcp.f32 %v1132_v30 }
0x13f9   : > { %v1733_v31 = vpop.eup %1732 }
0x13fa   : > { %v1136_v35 = vmul.f32 %v1733_v31, %v1072_v10 }
0x145a   : > { %v1139_v32 = vpop.permute.xlu0 %1138 }
0x145b   : > { %v1141_v33 = vmul.f32 %v1733_v31, %v1139_v32 }
0x145d   : > { %1143 = vrot.lane.b32.xlu1 %v1141_v33, %s1852_s21 }
0x1461   : > { %553 = vrot.lane.b32.xlu1 %v2039_v38, %s1853_s19 }
0x1465   : > { %726 = vrot.lane.b32.xlu1 %v2097_v34, %s1853_s19 }
0x1469   : > { %900 = vrot.lane.b32.xlu1 %v2138_v27, %s1853_s19 }
0x146d   : > { %1074 = vrot.lane.b32.xlu1 %v1071_v19, %s1853_s19 }
0x14cf   : > { %v1144_v36 = vpop.permute.xlu1 %1143 }
0x14d0   : > { %v1146_v37 = vadd.f32 %v1144_v36, %v1136_v35 }
0x14d2   : > { %1734 = vtanh.f32 %v1146_v37  ;;  %v1159_v38 = vsel %vm1157_vm10, %v1146_v37, %v1072_v10 }
0x14d3   : > { %v554_v4 = vpop.permute.xlu1 %553  ;;  %1168 = vrot.lane.b32.xlu1 %v1159_v38, %s1854_s20 }
0x14d4   : > { %556 = vst.msk [vmem:[#allocation5] sm:$0xff] %vm363_vm2, %v554_v4 }
0x14d7   : > { %v727_v34 = vpop.permute.xlu1 %726 }
0x14d8   : > { %730 = vst.msk [vmem:[#allocation5 + $0x10] sm:$0xff] %vm363_vm2, %v727_v34 }
0x14db   : > { %v901_v27 = vpop.permute.xlu1 %900  ;;  %v1172_v55 = vld [vmem:[#allocation5] sm:$0xff] }
0x14dc   : > { %904 = vst.msk [vmem:[#allocation5 + $0x20] sm:$0xff] %vm363_vm2, %v901_v27 }
0x14df   : > { %v1735_v39 = vpop.eup %1734  ;;  %v1075_v40 = vpop.permute.xlu1 %1074  ;;  %v1174_v51 = vld [vmem:[#allocation5 + $0x10] sm:$0xff] }
0x14e0   : > { %1078 = vst.msk [vmem:[#allocation5 + $0x30] sm:$0xff] %vm363_vm2, %v1075_v40  ;;  %1149 = vrot.lane.b32.xlu0 %v1735_v39, %s1852_s21  ;;  %v1180_v57 = vcombine.low %v1172_v55, %v1174_v51  ;;  %v1181_v61 = vcombine.high %v1172_v55, %v1174_v51 }
0x14e2   : > { %v1188_v5 = vrot.slane %v1180_v57, %v1187_v56  ;;  %v1195_v18 = vrot.slane %v1181_v61, %v1187_v56 }
0x14e3   : > { %v1176_v62 = vld [vmem:[#allocation5 + $0x20] sm:$0xff] }
0x14e4   : > { %639 = vrot.lane.b32.xlu0 %v2068_v2, %s1853_s19 }
0x14e7   : > { %v1178_v58 = vld [vmem:[#allocation5 + $0x30] sm:$0xff] }
0x14e8   : > { %813 = vrot.lane.b32.xlu0 %v2118_v59, %s1853_s19  ;;  %v1212_v1 = vcombine.low %v1176_v62, %v1178_v58  ;;  %v1213_v8 = vcombine.high %v1176_v62, %v1178_v58 }
0x14ea   : > { %v1220_v21 = vrot.slane %v1212_v1, %v1187_v56  ;;  %v1227_v22 = vrot.slane %v1213_v8, %v1187_v56 }
0x14ec   : > { %987 = vrot.lane.b32.xlu0 %v2158_v50, %s1853_s19 }
0x1545   : > { %v2200_v3 = vpop.permute.xlu1 %1168 }
0x1546   : > { %1171 = vst.msk [vmem:[#allocation3] sm:$0xff] %vm363_vm2, %v2200_v3 }
0x1552   : > { %v1150_v6 = vpop.permute.xlu0 %1149 }
0x1553   : > { %v1152_v42 = vmul.f32 %v1733_v31, %v1150_v6 }
0x1555   : > { %v1158_v11 = vsel %vm1157_vm10, %v1152_v42, %v1071_v19  ;;  %v1251_v19 = vsub.s32 %v1248_v63, %v1186_v49 }
0x1556   : > { %1161 = vrot.lane.b32.xlu0 %v1158_v11, %s1853_s19  ;;  %v640_v43 = vpop.permute.xlu0 %639 }
0x1557   : > { %643 = vst.msk [vmem:[#allocation5 + $0x8] sm:$0xff] %vm363_vm2, %v640_v43 }
0x155a   : > { %v814_v2 = vpop.permute.xlu0 %813 }
0x155b   : > { %817 = vst.msk [vmem:[#allocation5 + $0x18] sm:$0xff] %vm363_vm2, %v814_v2 }
0x155e   : > { %v988_v59 = vpop.permute.xlu0 %987  ;;  %v1173_v41 = vld [vmem:[#allocation5 + $0x8] sm:$0xff] }
0x155f   : > { %991 = vst.msk [vmem:[#allocation5 + $0x28] sm:$0xff] %vm363_vm2, %v988_v59 }
0x1562   : > { %v1175_v47 = vld [vmem:[#allocation5 + $0x18] sm:$0xff] }
0x1563   : > { %v1196_v54 = vcombine.low %v1173_v41, %v1175_v47  ;;  %v1197_v60 = vcombine.high %v1173_v41, %v1175_v47 }
0x1565   : > { %v1204_v0 = vrot.slane %v1196_v54, %v1187_v56  ;;  %v1211_v7 = vrot.slane %v1197_v60, %v1187_v56 }
0x1566   : > { %v1177_v14 = vld [vmem:[#allocation5 + $0x28] sm:$0xff] }
0x1567   : > { %v1244_v20 = vcombine.low %v1188_v5, %v1204_v0  ;;  %v1245_v9 = vcombine.high %v1188_v5, %v1204_v0  ;;  %v1260_v25 = vcombine.low %v1195_v18, %v1211_v7  ;;  %v1261_v26 = vcombine.high %v1195_v18, %v1211_v7 }
0x1569   : > { %v1252_v31 = vrot.slane %v1244_v20, %v1251_v19  ;;  %v1259_v32 = vrot.slane %v1245_v9, %v1251_v19  ;;  %v1268_v36 = vrot.slane %v1260_v25, %v1251_v19  ;;  %v1275_v37 = vrot.slane %v1261_v26, %v1251_v19 }
0x15c8   : > { %v2209_v50 = vpop.permute.xlu0 %1161 }
0x15c9   : > { %1165 = vst.msk [vmem:[#allocation5 + $0x38] sm:$0xff] %vm363_vm2, %v2209_v50  ;;  %1166 = vst.msk [vmem:[#allocation2] sm:$0xff] %vm363_vm2, %v2209_v50 }
0x15d0   : > { %v1179_v15 = vld [vmem:[#allocation5 + $0x38] sm:$0xff] }
0x15d1   : > { %v1228_v16 = vcombine.low %v1177_v14, %v1179_v15  ;;  %v1229_v17 = vcombine.high %v1177_v14, %v1179_v15 }
0x15d3   : > { %v1236_v23 = vrot.slane %v1228_v16, %v1187_v56  ;;  %v1243_v24 = vrot.slane %v1229_v17, %v1187_v56 }
0x15d5   : > { %v1276_v12 = vcombine.low %v1220_v21, %v1236_v23  ;;  %v1277_v28 = vcombine.high %v1220_v21, %v1236_v23  ;;  %v1292_v29 = vcombine.low %v1227_v22, %v1243_v24  ;;  %v1293_v30 = vcombine.high %v1227_v22, %v1243_v24 }
0x15d7   : > { %v1284_v33 = vrot.slane %v1276_v12, %v1251_v19  ;;  %v1291_v13 = vrot.slane %v1277_v28, %v1251_v19  ;;  %v1300_v10 = vrot.slane %v1292_v29, %v1251_v19  ;;  %v1307_v35 = vrot.slane %v1293_v30, %v1251_v19 }
0x15d9   : > { %v1308_v38 = vcombine.low %v1252_v31, %v1284_v33  ;;  %v1309_v4 = vcombine.high %v1252_v31, %v1284_v33  ;;  %v1310_v34 = vcombine.low %v1259_v32, %v1291_v13  ;;  %v1311_v27 = vcombine.high %v1259_v32, %v1291_v13 }
0x15da   : > { %v1312_v39 = vcombine.low %v1268_v36, %v1300_v10  ;;  %v1313_v40 = vcombine.high %v1268_v36, %v1300_v10  ;;  %v1314_v6 = vcombine.low %v1275_v37, %v1307_v35  ;;  %v1315_v42 = vcombine.high %v1275_v37, %v1307_v35  ;;  %1327 = sbr.rel (%p1486_p9) target bundleno = 5600 (0x15e0), region = 52 }
0x15db   : > { %1316 = vst.msk [vmem:[%s1971_s25] sm:$0xff] %vm363_vm2, %v1308_v38  ;;  %1317 = vst.msk [vmem:[%s1971_s25 + $0x8] sm:$0xff] %vm363_vm2, %v1309_v4 }
0x15dc   : > { %1318 = vst.msk [vmem:[%s1971_s25 + $0x10] sm:$0xff] %vm363_vm2, %v1310_v34  ;;  %1319 = vst.msk [vmem:[%s1971_s25 + $0x18] sm:$0xff] %vm363_vm2, %v1311_v27 }
0x15dd   : > { %1320 = vst.msk [vmem:[%s1971_s25 + $0x20] sm:$0xff] %vm363_vm2, %v1312_v39  ;;  %1321 = vst.msk [vmem:[%s1971_s25 + $0x28] sm:$0xff] %vm363_vm2, %v1313_v40 }
0x15de   : > { %1322 = vst.msk [vmem:[%s1971_s25 + $0x30] sm:$0xff] %vm363_vm2, %v1314_v6  ;;  %1323 = vst.msk [vmem:[%s1971_s25 + $0x38] sm:$0xff] %vm363_vm2, %v1315_v42 }
0x15df   : > { %1328 = vst.msk [vmem:[#allocation8] sm:$0xff] %vm363_vm2, %v2209_v50  ;;  %1329 = vst.msk [vmem:[#allocation10] sm:$0xff] %vm363_vm2, %v2200_v3 }
0x15e0 PF: > { %s1857_s18 = smov [#allocation8]   ;;  %s1488_s19 = sshll.u32 %s1929_s9, 7 }
0x15e1   : > { %s1357_s21 = sshll.u32 %s1857_s18, 4  ;;  %s2240_s26 = scalar_lea.hbm %s2311_s6, %s1488_s19  ;;  %s1358_s21 = int_to_ptr.vmem [resolvable:$true] %s1357_s21 }
0x15e2   : > { %s1736_s24 = scalar_lea.vmem %s1358_s21, 128  ;;  %p1743_p13 = scmp.lt.s32.totalorder %s1358_s21, %s1358_s21 }
0x15e3   : > { %p1737_p10 = scmp.ne.s32.totalorder %s1358_s21, %s1736_s24  ;;  %p1744_p0 = scmp.lt.s32.totalorder %s1736_s24, %s1736_s24 }
0x15e5   : > { %p1738_p11 = pnand %p1737_p10, %p172_p2  ;;  %p1745_p1 = por %p1744_p0, %p1743_p13 }
0x15e7   : > { %p1739_p12 = pneg %p1738_p11 }
0x15e9   : > { %p1746_p3 = pnand %p1745_p1, %p1739_p12 }
0x15eb   : > { %1749 = shalt.err (!%p1746_p3)
}
0x15ec   : > { %1603 = dma.vmem_to_hbm [thread:$0]  (%p172_p2), %s1358_s21, 128, %s2312_s7, [#allocation9]  }
0x15ed   : > { %s1343_s13 = sshll.u32 %s1971_s25, 4  ;;  %s2254_s20 = scalar_lea.sflag [#allocation7], %s289_s17  ;;  %s2250_s13 = int_to_ptr.vmem [resolvable:$true] %s1343_s13 }
0x15ee   : > { %s1760_s18 = scalar_lea.vmem %s2250_s13, 1024  ;;  %s1858_s19 = smov [#allocation6]  }
0x15ef   : > { %p1761_p4 = scmp.ne.s32.totalorder %s2250_s13, %s1760_s18  ;;  %s1764_s22 = sshll.u32 %s1858_s19, 4  ;;  %s1765_s22 = int_to_ptr.vmem [resolvable:$false] %s1764_s22 }
0x15f0   : > { %s1766_s23 = scalar_lea.vmem %s1765_s22, 2048  ;;  %p1767_p9 = scmp.lt.s32.totalorder %s2250_s13, %s1765_s22 }
0x15f1   : > { %p1762_p7 = pnand %p1761_p4, %p1948_p5  ;;  %p1768_p10 = scmp.lt.s32.totalorder %s1766_s23, %s1760_s18 }
0x15f3   : > { %p1763_p8 = pneg %p1762_p7  ;;  %p1769_p11 = por %p1768_p10, %p1767_p9 }
0x15f5   : > { %p1770_p12 = pnand %p1769_p11, %p1763_p8 }
0x15f7   : > { %1773 = shalt.err (!%p1770_p12)
}
0x15f8   : > { %s1774_s17 = scalar_lea.hbm %s2240_s26, 1024  ;;  %s1778_s24 = scalar_lea.hbm %s2311_s6, 2048 }
0x15f9   : > { %p1775_p13 = scmp.ne.s32.totalorder %s2240_s26, %s1774_s17  ;;  %p1779_p3 = scmp.lt.s32.totalorder %s2240_s26, %s2311_s6 }
0x15fa   : > { %p1780_p4 = scmp.lt.s32.totalorder %s1778_s24, %s1774_s17 }
0x15fb   : > { %p1776_p0 = pnand %p1775_p13, %p1948_p5 }
0x15fc   : > { %p1781_p7 = por %p1780_p4, %p1779_p3 }
0x15fd   : > { %p1777_p1 = pneg %p1776_p0 }
0x15ff   : > { %p1782_p8 = pnand %p1781_p7, %p1777_p1 }
0x1601   : > { %1785 = shalt.err (!%p1782_p8)
}
0x1602   : > { %s1859_s18 = smov 128   ;;  %s1860_s19 = smov 256  }
0x1603   : > { %s1861_s22 = smov 8   ;;  %s1862_s23 = smov [#allocation10]  }
0x1604   : > { %1601 = dma.vmem_to_hbm [thread:$0]  (%p1948_p5), %s2250_s13, 1024, %s2240_s26, %s2254_s20, %s1859_s18, %s1860_s19, %s1861_s22  }
0x1605   : > { %s1368_s25 = sshll.u32 %s1862_s23, 4  ;;  %s1369_s25 = int_to_ptr.vmem [resolvable:$true] %s1368_s25 }
0x1606   : > { %s1786_s21 = scalar_lea.vmem %s1369_s25, 128  ;;  %p1793_p12 = scmp.lt.s32.totalorder %s1369_s25, %s1369_s25 }
0x1607   : > { %p1787_p9 = scmp.ne.s32.totalorder %s1369_s25, %s1786_s21  ;;  %p1794_p13 = scmp.lt.s32.totalorder %s1786_s21, %s1786_s21 }
0x1609   : > { %p1788_p10 = pnand %p1787_p9, %p172_p2  ;;  %p1795_p0 = por %p1794_p13, %p1793_p12 }
0x160b   : > { %p1789_p11 = pneg %p1788_p10 }
0x160d   : > { %p1796_p1 = pnand %p1795_p0, %p1789_p11 }
0x160f   : > { %1799 = shalt.err (!%p1796_p1)
}
0x1610   : > { %1605 = dma.vmem_to_hbm [thread:$0]  (%p172_p2), %s1369_s25, 128, %s2313_s8, [#allocation9]  }
0x1611   : > { %1827 = dma.done.wait (%p172_p2), [#allocation9], 256  }
0x1612   : > { %1829 = vsyncadd (%p172_p2), [#allocation9], 4294967040 }
0x1613 PF: > { %p1619_p5 = scmp.ge.s32.totalorder %s1848_s30, 2  ;;  %s1388_s15 = sand.u32 1, %s1836_s27  }
0x1614   : > { %s1389_s26 = scalar_lea.sflag [#allocation7], %s1388_s15 }
0x1615   : > { %p1612_p3 = pnand %p1619_p5, %p1952_p6 }
0x1617   : > { %p1613_p4 = pneg %p1612_p3 }
0x1619   : > { %1831 = dma.done.wait (%p1613_p4), %s1389_s26, 1024  }
0x161a   : > { %1833 = vsyncadd (%p1613_p4), %s1389_s26, 4294966272  ;;  %p20_p7 = scmp.ge.s32.totalorder %s1933_s11, 4   ;;  %s2318_s27 = smov %s1840_s28 }
0x161b   : > { %s2319_s28 = smov %s1844_s29  ;;  %s2320_s29 = smov %s1944_s14 }
0x161c   : > { %s2321_s30 = smov %s1933_s11  ;;  %22 = sbr.rel (!%p20_p7) target bundleno = 4 (0x4), region = 117 }
0x1621   :  { %1394 = vsyncpa [#allocation7], 1 }
0x1622   :  { %1396 = vsyncpa [#allocation7 + $0x1], 1 }
0x1623   :  { %1397 = vsyncpa [#allocation9], 1 }

</bundles_post_ra>
